<compile_context>
chip_gen: v5e
topology: v5e:2x2
jax: 0.10.0
libtpu: 0.0.40
codegen_flags: <defaults>
</compile_context>

<pallas_src>
import jax
import jax.numpy as jnp
from jax import lax
from jax.experimental import pallas as pl
from jax.experimental.pallas import tpu as pltpu

# ---- synthetic model_parameters (small) -------------------------------------
EMB_IN = 32               # pooled token-embedding dim fed to the text encoder
EMB_DIM = 32              # shared embedding dim consumed by SimilarityModule
FC2_TEXT_DIM = 32
FC2_VIS_DIM = 32
FC3_TEXT_DIM = 32
FC3_VIS_DIM = 32
FC1_MULTIMODAL_DIM = 64
FC2_MULTIMODAL_DIM = 32
NB_CLASSES = 4
VOCAB = 64
N_IMG, C_IMG = 2, 3
VIS_IN = N_IMG * C_IMG    # pooled visual feature dim (6)

B_PAD = 8                 # batch padded to one sublane tile
FUSED_DIM = 2 * FC3_TEXT_DIM + FC3_VIS_DIM   # 96
SLAB_W = 128              # every slab row block is padded to 128 lanes
OUT_W = 128               # single lane-dense output width
C_VIS = FC2_TEXT_DIM + EMB_DIM               # column offset of visual encoder

# Row offsets of the weight blocks inside the packed [W_ROWS, 128] slab.
R_EMB = 0                                    # embedding table   [64, :32]
R_ENC = R_EMB + VOCAB                        # encoder           [32, :128]
R_FC3 = R_ENC + EMB_IN                       # fc3_text|fc3_vis  [32, :64]
R_S3 = R_FC3 + FC2_TEXT_DIM                  # fc1_mm|fc_l2|fc_l3[96, :72]
R_2M = R_S3 + FUSED_DIM                      # fc2_multimodal    [64, :32]
R_L4 = R_2M + FC1_MULTIMODAL_DIM             # fc_l4             [32, :4]
W_ROWS = R_L4 + FC2_MULTIMODAL_DIM           # 320


# ------------------------------ Pallas kernel --------------------------------
def fused_model_kernel(tok_ref, mask_ref, img_ref, w_ref, b_ref, out_ref,
                       stack_ref, fused_ref):
    f32 = jnp.float32
    NT = 2 * B_PAD                       # stacked text+title rows (16)
    NTL = tok_ref.shape[0]               # flattened token count (2*B_PAD*L)
    seq = NTL // NT                      # tokens per row
    hw = img_ref.shape[1] // VIS_IN      # spatial size per pooled channel

    # ---- biases: one [8,128] load, sliced as values ----
    bias = b_ref[...]
    b_enc, b_fc3, b_s3 = bias[0:1, :], bias[1:2, :], bias[2:3, :]
    b_2m, b_l4 = bias[3:4, :], bias[4:5, :]

    # ---- token one-hot "gather" + masked mean pool, all on the MXU ----
    tok = tok_ref[...]                                            # [NTL,1] i32
    vocab_iota = lax.broadcasted_iota(jnp.int32, (NTL, VOCAB), 1)
    one_hot = (tok == vocab_iota).astype(f32)                     # [NTL,VOCAB]
    gathered = jnp.dot(one_hot, w_ref[R_EMB:R_EMB + VOCAB, :],
                       preferred_element_type=f32)                # [NTL,128]

    col = lax.broadcasted_iota(jnp.int32, (NT, NTL), 1)
    row = lax.broadcasted_iota(jnp.int32, (NT, NTL), 0)
    row_base = row * seq
    sel = jnp.logical_and(col >= row_base, col < row_base + seq).astype(f32)
    weighted = sel * mask_ref[...]                                # [NT,NTL]
    count = jnp.sum(weighted, axis=-1, keepdims=True)             # [NT,1]
    pool = weighted / jnp.maximum(count, 1.0)
    pooled_tt = jnp.dot(pool, gathered,
                        preferred_element_type=f32)[:, 0:EMB_IN]  # [16,32]

    # ---- image global-average-pool over spatial dims (lane reductions) ----
    img = img_ref[...]                                            # [8,VIS_IN*hw]
    col32 = lax.broadcasted_iota(jnp.int32, (B_PAD, EMB_IN), 1)
    img_pooled = jnp.zeros((B_PAD, EMB_IN), f32)                  # padded to 32
    for i in range(VIS_IN):   # static unroll
        s_i = jnp.sum(img[:, i * hw:(i + 1) * hw], axis=-1,
                      keepdims=True) * (1.0 / hw)                 # [8,1]
        img_pooled = img_pooled + jnp.where(col32 == i, s_i, 0.0)

    # ---- encoders: one MXU pass for text + title + visual ----
    stack_ref[0:NT, :] = pooled_tt
    stack_ref[NT:NT + B_PAD, :] = img_pooled
    enc_out = jnp.dot(stack_ref[...], w_ref[R_ENC:R_ENC + EMB_IN, :],
                      preferred_element_type=f32) + b_enc          # [24,128]

    feat_tt = jnp.maximum(enc_out[0:NT, 0:FC2_TEXT_DIM], 0.0)
    emb_tt = enc_out[0:NT, FC2_TEXT_DIM:FC2_TEXT_DIM + EMB_DIM]
    feat_v = jnp.maximum(enc_out[NT:NT + B_PAD, C_VIS:C_VIS + FC2_VIS_DIM], 0.0)
    emb_v = enc_out[NT:NT + B_PAD,
                    C_VIS + FC2_VIS_DIM:C_VIS + FC2_VIS_DIM + EMB_DIM]

    # ---- SimilarityModule: pairwise cosine similarity (norms deduped) ----
    e_t, e_ti = emb_tt[0:B_PAD, :], emb_tt[B_PAD:NT, :]
    n_t = jnp.sum(e_t * e_t, axis=-1, keepdims=True)
    n_ti = jnp.sum(e_ti * e_ti, axis=-1, keepdims=True)
    n_v = jnp.sum(emb_v * emb_v, axis=-1, keepdims=True)
    d01 = jnp.sum(e_t * e_ti, axis=-1, keepdims=True)
    d02 = jnp.sum(e_t * emb_v, axis=-1, keepdims=True)
    d12 = jnp.sum(e_ti * emb_v, axis=-1, keepdims=True)
    eps = 1e-8
    c01 = d01 * lax.rsqrt(n_t * n_ti + eps)
    c02 = d02 * lax.rsqrt(n_t * n_v + eps)
    c12 = d12 * lax.rsqrt(n_ti * n_v + eps)
    col3 = lax.broadcasted_iota(jnp.int32, (B_PAD, 3), 1)
    sim = jnp.where(col3 == 0, c01, jnp.where(col3 == 1, c02, c12))   # [8,3]

    # ---- fc3 heads (dropout = identity in eval): one MXU pass ----
    stack_ref[0:NT, :] = feat_tt
    stack_ref[NT:NT + B_PAD, :] = feat_v
    f_out = jnp.maximum(
        jnp.dot(stack_ref[...], w_ref[R_FC3:R_FC3 + FC2_TEXT_DIM, :],
                preferred_element_type=f32) + b_fc3, 0.0)             # [24,128]
    tf3 = f_out[0:B_PAD, 0:FC3_TEXT_DIM]
    ti3 = f_out[B_PAD:NT, 0:FC3_TEXT_DIM]
    vf3 = f_out[NT:NT + B_PAD, FC3_TEXT_DIM:FC3_TEXT_DIM + FC3_VIS_DIM]

    # ---- fc1_multimodal + fc_l2 + fc_l3 in ONE MXU pass over the concat ----
    fused_ref[:, 0:FC3_TEXT_DIM] = tf3
    fused_ref[:, FC3_TEXT_DIM:2 * FC3_TEXT_DIM] = ti3
    fused_ref[:, 2 * FC3_TEXT_DIM:FUSED_DIM] = vf3
    s_out = jnp.dot(fused_ref[...], w_ref[R_S3:R_S3 + FUSED_DIM, :],
                    preferred_element_type=f32) + b_s3                # [8,128]
    m1 = jnp.maximum(s_out[:, 0:FC1_MULTIMODAL_DIM], 0.0)
    l2 = s_out[:, FC1_MULTIMODAL_DIM:FC1_MULTIMODAL_DIM + NB_CLASSES]
    l3 = s_out[:, FC1_MULTIMODAL_DIM + NB_CLASSES:
               FC1_MULTIMODAL_DIM + 2 * NB_CLASSES]

    # ---- fc2_multimodal + fc_l4 ----
    m2 = jnp.maximum(
        jnp.dot(m1, w_ref[R_2M:R_2M + FC1_MULTIMODAL_DIM, :],
                preferred_element_type=f32) + b_2m, 0.0)[:, 0:FC2_MULTIMODAL_DIM]
    l4 = (jnp.dot(m2, w_ref[R_L4:R_L4 + FC2_MULTIMODAL_DIM, :],
                  preferred_element_type=f32) + b_l4)[:, 0:NB_CLASSES]

    # ---- single lane-dense [8,128] output: sim | l2 | l3 | l4 | zero pad ----
    out_ref[...] = jnp.zeros((B_PAD, OUT_W), f32)
    out_ref[:, 0:3] = sim
    out_ref[:, 3:3 + NB_CLASSES] = l2
    out_ref[:, 3 + NB_CLASSES:3 + 2 * NB_CLASSES] = l3
    out_ref[:, 3 + 2 * NB_CLASSES:3 + 3 * NB_CLASSES] = l4


# --------------------------- parameter construction --------------------------
def _dense(key, fan_in, fan_out):
    """PyTorch nn.Linear-style uniform(-1/sqrt(fan_in), 1/sqrt(fan_in)) init."""
    k_w, k_b = jax.random.split(key)
    bound = 1.0 / jnp.sqrt(jnp.float32(fan_in))
    w = jax.random.uniform(k_w, (fan_in, fan_out), jnp.float32, -bound, bound)
    b = jax.random.uniform(k_b, (fan_out,), jnp.float32, -bound, bound)
    return w, b


def init_params(key):
    ks = jax.random.split(key, 12)
    p = {}
    p["emb_table"] = 0.02 * jax.random.normal(ks[0], (VOCAB, EMB_IN), jnp.float32)
    p["w_t_feat"], p["b_t_feat"] = _dense(ks[1], EMB_IN, FC2_TEXT_DIM)
    p["w_t_emb"], p["b_t_emb"] = _dense(ks[2], EMB_IN, EMB_DIM)
    p["w_v_feat"], p["b_v_feat"] = _dense(ks[3], VIS_IN, FC2_VIS_DIM)
    p["w_v_emb"], p["b_v_emb"] = _dense(ks[4], VIS_IN, EMB_DIM)
    p["w3t"], p["b3t"] = _dense(ks[5], FC2_TEXT_DIM, FC3_TEXT_DIM)
    p["w3v"], p["b3v"] = _dense(ks[6], FC2_VIS_DIM, FC3_VIS_DIM)
    p["w1m"], p["b1m"] = _dense(ks[7], FUSED_DIM, FC1_MULTIMODAL_DIM)
    p["w2m"], p["b2m"] = _dense(ks[8], FC1_MULTIMODAL_DIM, FC2_MULTIMODAL_DIM)
    p["wl2"], p["bl2"] = _dense(ks[9], 2 * FC3_TEXT_DIM, NB_CLASSES)
    p["wl3"], p["bl3"] = _dense(ks[10], FC3_VIS_DIM, NB_CLASSES)
    p["wl4"], p["bl4"] = _dense(ks[11], FC2_MULTIMODAL_DIM, NB_CLASSES)
    return p


def pack_params(p):
    """Pack every weight/bias into one [320,128] slab + one [8,128] bias slab."""
    w = jnp.zeros((W_ROWS, SLAB_W), jnp.float32)
    w = w.at[R_EMB:R_EMB + VOCAB, 0:EMB_IN].set(p["emb_table"])
    # encoder block: [w_t_feat | w_t_emb | w_v_feat | w_v_emb]
    w = w.at[R_ENC:R_ENC + EMB_IN, 0:FC2_TEXT_DIM].set(p["w_t_feat"])
    w = w.at[R_ENC:R_ENC + EMB_IN,
             FC2_TEXT_DIM:FC2_TEXT_DIM + EMB_DIM].set(p["w_t_emb"])
    w = w.at[R_ENC:R_ENC + VIS_IN, C_VIS:C_VIS + FC2_VIS_DIM].set(p["w_v_feat"])
    w = w.at[R_ENC:R_ENC + VIS_IN,
             C_VIS + FC2_VIS_DIM:C_VIS + FC2_VIS_DIM + EMB_DIM].set(p["w_v_emb"])
    # fc3 block: [w3t | w3v]
    w = w.at[R_FC3:R_FC3 + FC2_TEXT_DIM, 0:FC3_TEXT_DIM].set(p["w3t"])
    w = w.at[R_FC3:R_FC3 + FC2_VIS_DIM,
             FC3_TEXT_DIM:FC3_TEXT_DIM + FC3_VIS_DIM].set(p["w3v"])
    # stage-3 block: [w1m | wl2 | wl3] over the [tf3|ti3|vf3] contraction
    w = w.at[R_S3:R_S3 + FUSED_DIM, 0:FC1_MULTIMODAL_DIM].set(p["w1m"])
    w = w.at[R_S3:R_S3 + 2 * FC3_TEXT_DIM,
             FC1_MULTIMODAL_DIM:FC1_MULTIMODAL_DIM + NB_CLASSES].set(p["wl2"])
    w = w.at[R_S3 + 2 * FC3_TEXT_DIM:R_S3 + FUSED_DIM,
             FC1_MULTIMODAL_DIM + NB_CLASSES:
             FC1_MULTIMODAL_DIM + 2 * NB_CLASSES].set(p["wl3"])
    w = w.at[R_2M:R_2M + FC1_MULTIMODAL_DIM, 0:FC2_MULTIMODAL_DIM].set(p["w2m"])
    w = w.at[R_L4:R_L4 + FC2_MULTIMODAL_DIM, 0:NB_CLASSES].set(p["wl4"])

    b = jnp.zeros((8, SLAB_W), jnp.float32)
    b = b.at[0, 0:FC2_TEXT_DIM].set(p["b_t_feat"])
    b = b.at[0, FC2_TEXT_DIM:FC2_TEXT_DIM + EMB_DIM].set(p["b_t_emb"])
    b = b.at[0, C_VIS:C_VIS + FC2_VIS_DIM].set(p["b_v_feat"])
    b = b.at[0, C_VIS + FC2_VIS_DIM:C_VIS + FC2_VIS_DIM + EMB_DIM].set(p["b_v_emb"])
    b = b.at[1, 0:FC3_TEXT_DIM].set(p["b3t"])
    b = b.at[1, FC3_TEXT_DIM:FC3_TEXT_DIM + FC3_VIS_DIM].set(p["b3v"])
    b = b.at[2, 0:FC1_MULTIMODAL_DIM].set(p["b1m"])
    b = b.at[2, FC1_MULTIMODAL_DIM:FC1_MULTIMODAL_DIM + NB_CLASSES].set(p["bl2"])
    b = b.at[2, FC1_MULTIMODAL_DIM + NB_CLASSES:
             FC1_MULTIMODAL_DIM + 2 * NB_CLASSES].set(p["bl3"])
    b = b.at[3, 0:FC2_MULTIMODAL_DIM].set(p["b2m"])
    b = b.at[4, 0:NB_CLASSES].set(p["bl4"])
    return w, b


# ------------------------------- forward glue ---------------------------------
def multiple_images_forward(w_slab, b_slab, text, title, image):
    """text/title = (tokens [B,L] int32, mask [B,L] f32); image = [B,N_IMG,C,H,W]."""
    tok_t, mask_t = text
    tok_ti, mask_ti = title
    B, L = tok_t.shape
    assert B <= B_PAD

    def pad_rows(x):
        return jnp.pad(x, ((0, B_PAD - x.shape[0]),) + ((0, 0),) * (x.ndim - 1))

    tok_all = jnp.concatenate([pad_rows(tok_t), pad_rows(tok_ti)], axis=0)
    mask_all = jnp.concatenate([pad_rows(mask_t), pad_rows(mask_ti)], axis=0)
    tok_flat = tok_all.reshape(2 * B_PAD * L, 1).astype(jnp.int32)
    mask_flat = mask_all.reshape(1, 2 * B_PAD * L).astype(jnp.float32)
    img2d = pad_rows(image).reshape(B_PAD, -1).astype(jnp.float32)   # [8, N*C*H*W]

    vmem = pl.BlockSpec(memory_space=pltpu.MemorySpace.VMEM)
    out = pl.pallas_call(
        fused_model_kernel,
        out_shape=jax.ShapeDtypeStruct((B_PAD, OUT_W), jnp.float32),
        in_specs=[vmem] * 5,
        out_specs=vmem,
        scratch_shapes=[pltpu.VMEM((3 * B_PAD, EMB_IN), jnp.float32),
                        pltpu.VMEM((B_PAD, FUSED_DIM), jnp.float32)],
    )(tok_flat, mask_flat, img2d, w_slab, b_slab)

    sim_vec = out[:B, 0:3]
    logits_l2 = out[:B, 3:3 + NB_CLASSES]
    logits_l3 = out[:B, 3 + NB_CLASSES:3 + 2 * NB_CLASSES]
    logits_l4 = out[:B, 3 + 2 * NB_CLASSES:3 + 3 * NB_CLASSES]
    return sim_vec, logits_l2, logits_l3, logits_l4


# --------------------------- pure-JAX reference -------------------------------
def reference_forward(p, text, title, image):
    tok_t, mask_t = text
    tok_ti, mask_ti = title
    E = p["emb_table"]

    def pool_tokens(tok, mask):
        e = E[tok]
        m = mask[..., None]
        return (e * m).sum(axis=1) / jnp.maximum(m.sum(axis=1), 1.0)

    def text_enc(pooled):
        feat = jax.nn.relu(pooled @ p["w_t_feat"] + p["b_t_feat"])
        emb = pooled @ p["w_t_emb"] + p["b_t_emb"]
        return feat, emb

    text_feature, emb_text = text_enc(pool_tokens(tok_t, mask_t))
    title_feature, emb_title = text_enc(pool_tokens(tok_ti, mask_ti))

    B = image.shape[0]
    ip = image.mean(axis=(-2, -1)).reshape(B, -1)
    imgs_feature = jax.nn.relu(ip @ p["w_v_feat"] + p["b_v_feat"])
    emb_imgs = ip @ p["w_v_emb"] + p["b_v_emb"]

    def cos(a, b):
        return jnp.sum(a * b, -1) / jnp.sqrt(
            jnp.sum(a * a, -1) * jnp.sum(b * b, -1) + 1e-8)

    sim = jnp.stack([cos(emb_text, emb_title), cos(emb_text, emb_imgs),
                     cos(emb_title, emb_imgs)], axis=-1)

    tf3 = jax.nn.relu(text_feature @ p["w3t"] + p["b3t"])
    ti3 = jax.nn.relu(title_feature @ p["w3t"] + p["b3t"])
    vf3 = jax.nn.relu(imgs_feature @ p["w3v"] + p["b3v"])

    l2 = jnp.concatenate([tf3, ti3], -1) @ p["wl2"] + p["bl2"]
    l3 = vf3 @ p["wl3"] + p["bl3"]
    m1 = jax.nn.relu(jnp.concatenate([tf3, ti3, vf3], -1) @ p["w1m"] + p["b1m"])
    m2 = jax.nn.relu(m1 @ p["w2m"] + p["b2m"])
    l4 = m2 @ p["wl4"] + p["bl4"]
    return sim, l2, l3, l4


# ----------------------------------- main -------------------------------------
if __name__ == "__main__":
    root = jax.random.PRNGKey(0)
    k_param, k_tt, k_ti, k_img = jax.random.split(root, 4)

    params = init_params(k_param)
    w_slab, b_slab = pack_params(params)           # packed ONCE, reused per call

    B, L, H, W = 2, 8, 16, 16
    tokens_text = jax.random.randint(k_tt, (B, L), 0, VOCAB, dtype=jnp.int32)
    mask_text = jnp.ones((B, L), jnp.float32)
    tokens_title = jax.random.randint(k_ti, (B, L), 0, VOCAB, dtype=jnp.int32)
    mask_title = jnp.ones((B, L), jnp.float32)
    image = jax.random.normal(k_img, (B, N_IMG, C_IMG, H, W), jnp.float32)

    fwd = jax.jit(multiple_images_forward)
    sim_vec, logits_l2, logits_l3, logits_l4 = fwd(
        w_slab, b_slab, (tokens_text, mask_text), (tokens_title, mask_title),
        image)
    jax.block_until_ready((sim_vec, logits_l2, logits_l3, logits_l4))

    assert sim_vec.shape == (B, 3)
    assert logits_l2.shape == (B, NB_CLASSES)
    assert logits_l3.shape == (B, NB_CLASSES)
    assert logits_l4.shape == (B, NB_CLASSES)

    # numerical check against a plain-JAX reference of the same (stand-in) model
    refs = reference_forward(params, (tokens_text, mask_text),
                             (tokens_title, mask_title), image)
    for got, want in zip((sim_vec, logits_l2, logits_l3, logits_l4), refs):
        assert float(jnp.max(jnp.abs(got - want))) < 3e-2

    print("KERNEL_OK")
</pallas_src>

<mosaic_0001>
module attributes {stable_mosaic.version = 11 : i64} {
  func.func @fused_model_kernel(%arg0: memref<128x1xi32, #tpu.memory_space<vmem>>, %arg1: memref<1x128xf32, #tpu.memory_space<vmem>>, %arg2: memref<8x1536xf32, #tpu.memory_space<vmem>>, %arg3: memref<320x128xf32, #tpu.memory_space<vmem>>, %arg4: memref<8x128xf32, #tpu.memory_space<vmem>>, %arg5: memref<8x128xf32, #tpu.memory_space<vmem>>, %arg6: memref<24x32xf32, #tpu.memory_space<vmem>>, %arg7: memref<8x96xf32, #tpu.memory_space<vmem>>) attributes {dimension_semantics = [], scalar_prefetch = 0 : i64, scratch_operands = 2 : i64, tpu.core_type = #tpu.core_type<tc>} {
    %c0 = arith.constant 0 : index
    %c0_0 = arith.constant 0 : index
    %0 = vector.load %arg4[%c0, %c0_0] : memref<8x128xf32, #tpu.memory_space<vmem>>, vector<8x128xf32>
    %1 = vector.extract_strided_slice %0 {offsets = [0, 0], sizes = [1, 128], strides = [1, 1]} : vector<8x128xf32> to vector<1x128xf32>
    %2 = vector.extract_strided_slice %0 {offsets = [1, 0], sizes = [1, 128], strides = [1, 1]} : vector<8x128xf32> to vector<1x128xf32>
    %3 = vector.extract_strided_slice %0 {offsets = [2, 0], sizes = [1, 128], strides = [1, 1]} : vector<8x128xf32> to vector<1x128xf32>
    %4 = vector.extract_strided_slice %0 {offsets = [3, 0], sizes = [1, 128], strides = [1, 1]} : vector<8x128xf32> to vector<1x128xf32>
    %5 = vector.extract_strided_slice %0 {offsets = [4, 0], sizes = [1, 128], strides = [1, 1]} : vector<8x128xf32> to vector<1x128xf32>
    %c0_1 = arith.constant 0 : index
    %c0_2 = arith.constant 0 : index
    %6 = vector.load %arg0[%c0_1, %c0_2] : memref<128x1xi32, #tpu.memory_space<vmem>>, vector<128x1xi32>
    %7 = tpu.iota {dimensions = array<i32: 1>} : vector<128x64xi32>
    %8 = vector.broadcast %6 : vector<128x1xi32> to vector<128x64xi32>
    %9 = arith.cmpi eq, %8, %7 : vector<128x64xi32>
    %10 = arith.extui %9 : vector<128x64xi1> to vector<128x64xi32>
    %11 = arith.sitofp %10 : vector<128x64xi32> to vector<128x64xf32>
    %c0_3 = arith.constant 0 : index
    %c0_4 = arith.constant 0 : index
    %12 = vector.load %arg3[%c0_3, %c0_4] : memref<320x128xf32, #tpu.memory_space<vmem>>, vector<64x128xf32>
    %cst = arith.constant dense<0.000000e+00> : vector<128x128xf32>
    %13 = tpu.matmul %11, %12, %cst {dimension_numbers = #tpu.dot_dimension_numbers<[1], [0], [0], [1], [0, 0, 1, 1], [], []>} : vector<128x64xf32>, vector<64x128xf32>, vector<128x128xf32> -> vector<128x128xf32>
    %14 = tpu.iota {dimensions = array<i32: 1>} : vector<16x128xi32>
    %15 = tpu.iota {dimensions = array<i32: 0>} : vector<16x128xi32>
    %c8_i32 = arith.constant 8 : i32
    %16 = vector.broadcast %c8_i32 : i32 to vector<16x128xi32>
    %17 = arith.muli %15, %16 : vector<16x128xi32>
    %18 = arith.cmpi sge, %14, %17 : vector<16x128xi32>
    %c8_i32_5 = arith.constant 8 : i32
    %19 = vector.broadcast %c8_i32_5 : i32 to vector<16x128xi32>
    %20 = arith.addi %17, %19 : vector<16x128xi32>
    %21 = arith.cmpi slt, %14, %20 : vector<16x128xi32>
    %22 = arith.andi %18, %21 : vector<16x128xi1>
    %23 = arith.extui %22 : vector<16x128xi1> to vector<16x128xi32>
    %24 = arith.sitofp %23 : vector<16x128xi32> to vector<16x128xf32>
    %c0_6 = arith.constant 0 : index
    %c0_7 = arith.constant 0 : index
    %25 = vector.load %arg1[%c0_6, %c0_7] : memref<1x128xf32, #tpu.memory_space<vmem>>, vector<1x128xf32>
    %26 = vector.broadcast %25 : vector<1x128xf32> to vector<16x128xf32>
    %27 = arith.mulf %24, %26 : vector<16x128xf32>
    %cst_8 = arith.constant dense<0.000000e+00> : vector<16xf32>
    %28 = vector.multi_reduction <add>, %27, %cst_8 [1] : vector<16x128xf32> to vector<16xf32>
    %29 = vector.shape_cast %28 : vector<16xf32> to vector<16x1xf32>
    %cst_9 = arith.constant 1.000000e+00 : f32
    %30 = vector.broadcast %cst_9 : f32 to vector<16x1xf32>
    %31 = arith.maximumf %29, %30 : vector<16x1xf32>
    %32 = vector.broadcast %31 : vector<16x1xf32> to vector<16x128xf32>
    %33 = arith.divf %27, %32 : vector<16x128xf32>
    %cst_10 = arith.constant dense<0.000000e+00> : vector<16x128xf32>
    %34 = tpu.matmul %33, %13, %cst_10 {dimension_numbers = #tpu.dot_dimension_numbers<[1], [0], [0], [1], [0, 0, 1, 1], [], []>} : vector<16x128xf32>, vector<128x128xf32>, vector<16x128xf32> -> vector<16x128xf32>
    %35 = vector.extract_strided_slice %34 {offsets = [0, 0], sizes = [16, 32], strides = [1, 1]} : vector<16x128xf32> to vector<16x32xf32>
    %c0_11 = arith.constant 0 : index
    %c0_12 = arith.constant 0 : index
    %36 = vector.load %arg2[%c0_11, %c0_12] : memref<8x1536xf32, #tpu.memory_space<vmem>>, vector<8x1536xf32>
    %37 = tpu.iota {dimensions = array<i32: 1>} : vector<8x32xi32>
    %cst_13 = arith.constant 0.000000e+00 : f32
    %38 = vector.broadcast %cst_13 : f32 to vector<8x32xf32>
    %39 = vector.extract_strided_slice %36 {offsets = [0, 0], sizes = [8, 256], strides = [1, 1]} : vector<8x1536xf32> to vector<8x256xf32>
    %cst_14 = arith.constant dense<0.000000e+00> : vector<8xf32>
    %40 = vector.multi_reduction <add>, %39, %cst_14 [1] : vector<8x256xf32> to vector<8xf32>
    %41 = vector.shape_cast %40 : vector<8xf32> to vector<8x1xf32>
    %cst_15 = arith.constant 3.906250e-03 : f32
    %42 = vector.broadcast %cst_15 : f32 to vector<8x1xf32>
    %43 = arith.mulf %41, %42 : vector<8x1xf32>
    %c0_i32 = arith.constant 0 : i32
    %44 = vector.broadcast %c0_i32 : i32 to vector<8x32xi32>
    %45 = arith.cmpi eq, %37, %44 : vector<8x32xi32>
    %cst_16 = arith.constant 0.000000e+00 : f32
    %46 = vector.shape_cast %43 : vector<8x1xf32> to vector<8x1xf32>
    %47 = vector.broadcast %46 : vector<8x1xf32> to vector<8x32xf32>
    %48 = vector.broadcast %cst_16 : f32 to vector<8x32xf32>
    %49 = arith.select %45, %47, %48 : vector<8x32xi1>, vector<8x32xf32>
    %50 = arith.addf %38, %49 : vector<8x32xf32>
    %51 = vector.extract_strided_slice %36 {offsets = [0, 256], sizes = [8, 256], strides = [1, 1]} : vector<8x1536xf32> to vector<8x256xf32>
    %cst_17 = arith.constant dense<0.000000e+00> : vector<8xf32>
    %52 = vector.multi_reduction <add>, %51, %cst_17 [1] : vector<8x256xf32> to vector<8xf32>
    %53 = vector.shape_cast %52 : vector<8xf32> to vector<8x1xf32>
    %cst_18 = arith.constant 3.906250e-03 : f32
    %54 = vector.broadcast %cst_18 : f32 to vector<8x1xf32>
    %55 = arith.mulf %53, %54 : vector<8x1xf32>
    %c1_i32 = arith.constant 1 : i32
    %56 = vector.broadcast %c1_i32 : i32 to vector<8x32xi32>
    %57 = arith.cmpi eq, %37, %56 : vector<8x32xi32>
    %cst_19 = arith.constant 0.000000e+00 : f32
    %58 = vector.shape_cast %55 : vector<8x1xf32> to vector<8x1xf32>
    %59 = vector.broadcast %58 : vector<8x1xf32> to vector<8x32xf32>
    %60 = vector.broadcast %cst_19 : f32 to vector<8x32xf32>
    %61 = arith.select %57, %59, %60 : vector<8x32xi1>, vector<8x32xf32>
    %62 = arith.addf %50, %61 : vector<8x32xf32>
    %63 = vector.extract_strided_slice %36 {offsets = [0, 512], sizes = [8, 256], strides = [1, 1]} : vector<8x1536xf32> to vector<8x256xf32>
    %cst_20 = arith.constant dense<0.000000e+00> : vector<8xf32>
    %64 = vector.multi_reduction <add>, %63, %cst_20 [1] : vector<8x256xf32> to vector<8xf32>
    %65 = vector.shape_cast %64 : vector<8xf32> to vector<8x1xf32>
    %cst_21 = arith.constant 3.906250e-03 : f32
    %66 = vector.broadcast %cst_21 : f32 to vector<8x1xf32>
    %67 = arith.mulf %65, %66 : vector<8x1xf32>
    %c2_i32 = arith.constant 2 : i32
    %68 = vector.broadcast %c2_i32 : i32 to vector<8x32xi32>
    %69 = arith.cmpi eq, %37, %68 : vector<8x32xi32>
    %cst_22 = arith.constant 0.000000e+00 : f32
    %70 = vector.shape_cast %67 : vector<8x1xf32> to vector<8x1xf32>
    %71 = vector.broadcast %70 : vector<8x1xf32> to vector<8x32xf32>
    %72 = vector.broadcast %cst_22 : f32 to vector<8x32xf32>
    %73 = arith.select %69, %71, %72 : vector<8x32xi1>, vector<8x32xf32>
    %74 = arith.addf %62, %73 : vector<8x32xf32>
    %75 = vector.extract_strided_slice %36 {offsets = [0, 768], sizes = [8, 256], strides = [1, 1]} : vector<8x1536xf32> to vector<8x256xf32>
    %cst_23 = arith.constant dense<0.000000e+00> : vector<8xf32>
    %76 = vector.multi_reduction <add>, %75, %cst_23 [1] : vector<8x256xf32> to vector<8xf32>
    %77 = vector.shape_cast %76 : vector<8xf32> to vector<8x1xf32>
    %cst_24 = arith.constant 3.906250e-03 : f32
    %78 = vector.broadcast %cst_24 : f32 to vector<8x1xf32>
    %79 = arith.mulf %77, %78 : vector<8x1xf32>
    %c3_i32 = arith.constant 3 : i32
    %80 = vector.broadcast %c3_i32 : i32 to vector<8x32xi32>
    %81 = arith.cmpi eq, %37, %80 : vector<8x32xi32>
    %cst_25 = arith.constant 0.000000e+00 : f32
    %82 = vector.shape_cast %79 : vector<8x1xf32> to vector<8x1xf32>
    %83 = vector.broadcast %82 : vector<8x1xf32> to vector<8x32xf32>
    %84 = vector.broadcast %cst_25 : f32 to vector<8x32xf32>
    %85 = arith.select %81, %83, %84 : vector<8x32xi1>, vector<8x32xf32>
    %86 = arith.addf %74, %85 : vector<8x32xf32>
    %87 = vector.extract_strided_slice %36 {offsets = [0, 1024], sizes = [8, 256], strides = [1, 1]} : vector<8x1536xf32> to vector<8x256xf32>
    %cst_26 = arith.constant dense<0.000000e+00> : vector<8xf32>
    %88 = vector.multi_reduction <add>, %87, %cst_26 [1] : vector<8x256xf32> to vector<8xf32>
    %89 = vector.shape_cast %88 : vector<8xf32> to vector<8x1xf32>
    %cst_27 = arith.constant 3.906250e-03 : f32
    %90 = vector.broadcast %cst_27 : f32 to vector<8x1xf32>
    %91 = arith.mulf %89, %90 : vector<8x1xf32>
    %c4_i32 = arith.constant 4 : i32
    %92 = vector.broadcast %c4_i32 : i32 to vector<8x32xi32>
    %93 = arith.cmpi eq, %37, %92 : vector<8x32xi32>
    %cst_28 = arith.constant 0.000000e+00 : f32
    %94 = vector.shape_cast %91 : vector<8x1xf32> to vector<8x1xf32>
    %95 = vector.broadcast %94 : vector<8x1xf32> to vector<8x32xf32>
    %96 = vector.broadcast %cst_28 : f32 to vector<8x32xf32>
    %97 = arith.select %93, %95, %96 : vector<8x32xi1>, vector<8x32xf32>
    %98 = arith.addf %86, %97 : vector<8x32xf32>
    %99 = vector.extract_strided_slice %36 {offsets = [0, 1280], sizes = [8, 256], strides = [1, 1]} : vector<8x1536xf32> to vector<8x256xf32>
    %cst_29 = arith.constant dense<0.000000e+00> : vector<8xf32>
    %100 = vector.multi_reduction <add>, %99, %cst_29 [1] : vector<8x256xf32> to vector<8xf32>
    %101 = vector.shape_cast %100 : vector<8xf32> to vector<8x1xf32>
    %cst_30 = arith.constant 3.906250e-03 : f32
    %102 = vector.broadcast %cst_30 : f32 to vector<8x1xf32>
    %103 = arith.mulf %101, %102 : vector<8x1xf32>
    %c5_i32 = arith.constant 5 : i32
    %104 = vector.broadcast %c5_i32 : i32 to vector<8x32xi32>
    %105 = arith.cmpi eq, %37, %104 : vector<8x32xi32>
    %cst_31 = arith.constant 0.000000e+00 : f32
    %106 = vector.shape_cast %103 : vector<8x1xf32> to vector<8x1xf32>
    %107 = vector.broadcast %106 : vector<8x1xf32> to vector<8x32xf32>
    %108 = vector.broadcast %cst_31 : f32 to vector<8x32xf32>
    %109 = arith.select %105, %107, %108 : vector<8x32xi1>, vector<8x32xf32>
    %110 = arith.addf %98, %109 : vector<8x32xf32>
    %c0_32 = arith.constant 0 : index
    %c0_33 = arith.constant 0 : index
    %111 = vector.load %arg6[%c0_32, %c0_33] : memref<24x32xf32, #tpu.memory_space<vmem>>, vector<16x32xf32>
    tpu.vector_store %arg6[%c0_32, %c0_33], %35 {strides = array<i32>} : memref<24x32xf32, #tpu.memory_space<vmem>>, vector<16x32xf32>,
    %c16 = arith.constant 16 : index
    %c0_34 = arith.constant 0 : index
    %112 = vector.load %arg6[%c16, %c0_34] : memref<24x32xf32, #tpu.memory_space<vmem>>, vector<8x32xf32>
    tpu.vector_store %arg6[%c16, %c0_34], %110 {strides = array<i32>} : memref<24x32xf32, #tpu.memory_space<vmem>>, vector<8x32xf32>,
    %c0_35 = arith.constant 0 : index
    %c0_36 = arith.constant 0 : index
    %113 = vector.load %arg6[%c0_35, %c0_36] : memref<24x32xf32, #tpu.memory_space<vmem>>, vector<24x32xf32>
    %c64 = arith.constant 64 : index
    %c0_37 = arith.constant 0 : index
    %114 = vector.load %arg3[%c64, %c0_37] : memref<320x128xf32, #tpu.memory_space<vmem>>, vector<32x128xf32>
    %cst_38 = arith.constant dense<0.000000e+00> : vector<24x128xf32>
    %115 = tpu.matmul %113, %114, %cst_38 {dimension_numbers = #tpu.dot_dimension_numbers<[1], [0], [0], [1], [0, 0, 1, 1], [], []>} : vector<24x32xf32>, vector<32x128xf32>, vector<24x128xf32> -> vector<24x128xf32>
    %116 = vector.broadcast %1 : vector<1x128xf32> to vector<24x128xf32>
    %117 = arith.addf %115, %116 : vector<24x128xf32>
    %118 = vector.extract_strided_slice %117 {offsets = [0, 0], sizes = [16, 32], strides = [1, 1]} : vector<24x128xf32> to vector<16x32xf32>
    %cst_39 = arith.constant 0.000000e+00 : f32
    %119 = vector.broadcast %cst_39 : f32 to vector<16x32xf32>
    %120 = arith.maximumf %118, %119 : vector<16x32xf32>
    %121 = vector.extract_strided_slice %117 {offsets = [0, 32], sizes = [16, 32], strides = [1, 1]} : vector<24x128xf32> to vector<16x32xf32>
    %122 = vector.extract_strided_slice %117 {offsets = [16, 64], sizes = [8, 32], strides = [1, 1]} : vector<24x128xf32> to vector<8x32xf32>
    %cst_40 = arith.constant 0.000000e+00 : f32
    %123 = vector.broadcast %cst_40 : f32 to vector<8x32xf32>
    %124 = arith.maximumf %122, %123 : vector<8x32xf32>
    %125 = vector.extract_strided_slice %117 {offsets = [16, 96], sizes = [8, 32], strides = [1, 1]} : vector<24x128xf32> to vector<8x32xf32>
    %126 = vector.extract_strided_slice %121 {offsets = [0, 0], sizes = [8, 32], strides = [1, 1]} : vector<16x32xf32> to vector<8x32xf32>
    %127 = vector.extract_strided_slice %121 {offsets = [8, 0], sizes = [8, 32], strides = [1, 1]} : vector<16x32xf32> to vector<8x32xf32>
    %128 = arith.mulf %126, %126 : vector<8x32xf32>
    %cst_41 = arith.constant dense<0.000000e+00> : vector<8xf32>
    %129 = vector.multi_reduction <add>, %128, %cst_41 [1] : vector<8x32xf32> to vector<8xf32>
    %130 = vector.shape_cast %129 : vector<8xf32> to vector<8x1xf32>
    %131 = arith.mulf %127, %127 : vector<8x32xf32>
    %cst_42 = arith.constant dense<0.000000e+00> : vector<8xf32>
    %132 = vector.multi_reduction <add>, %131, %cst_42 [1] : vector<8x32xf32> to vector<8xf32>
    %133 = vector.shape_cast %132 : vector<8xf32> to vector<8x1xf32>
    %134 = arith.mulf %125, %125 : vector<8x32xf32>
    %cst_43 = arith.constant dense<0.000000e+00> : vector<8xf32>
    %135 = vector.multi_reduction <add>, %134, %cst_43 [1] : vector<8x32xf32> to vector<8xf32>
    %136 = vector.shape_cast %135 : vector<8xf32> to vector<8x1xf32>
    %137 = arith.mulf %126, %127 : vector<8x32xf32>
    %cst_44 = arith.constant dense<0.000000e+00> : vector<8xf32>
    %138 = vector.multi_reduction <add>, %137, %cst_44 [1] : vector<8x32xf32> to vector<8xf32>
    %139 = vector.shape_cast %138 : vector<8xf32> to vector<8x1xf32>
    %140 = arith.mulf %126, %125 : vector<8x32xf32>
    %cst_45 = arith.constant dense<0.000000e+00> : vector<8xf32>
    %141 = vector.multi_reduction <add>, %140, %cst_45 [1] : vector<8x32xf32> to vector<8xf32>
    %142 = vector.shape_cast %141 : vector<8xf32> to vector<8x1xf32>
    %143 = arith.mulf %127, %125 : vector<8x32xf32>
    %cst_46 = arith.constant dense<0.000000e+00> : vector<8xf32>
    %144 = vector.multi_reduction <add>, %143, %cst_46 [1] : vector<8x32xf32> to vector<8xf32>
    %145 = vector.shape_cast %144 : vector<8xf32> to vector<8x1xf32>
    %146 = arith.mulf %130, %133 : vector<8x1xf32>
    %cst_47 = arith.constant 9.99999993E-9 : f32
    %147 = vector.broadcast %cst_47 : f32 to vector<8x1xf32>
    %148 = arith.addf %146, %147 : vector<8x1xf32>
    %149 = math.rsqrt %148 : vector<8x1xf32>
    %150 = arith.mulf %139, %149 : vector<8x1xf32>
    %151 = arith.mulf %130, %136 : vector<8x1xf32>
    %cst_48 = arith.constant 9.99999993E-9 : f32
    %152 = vector.broadcast %cst_48 : f32 to vector<8x1xf32>
    %153 = arith.addf %151, %152 : vector<8x1xf32>
    %154 = math.rsqrt %153 : vector<8x1xf32>
    %155 = arith.mulf %142, %154 : vector<8x1xf32>
    %156 = arith.mulf %133, %136 : vector<8x1xf32>
    %cst_49 = arith.constant 9.99999993E-9 : f32
    %157 = vector.broadcast %cst_49 : f32 to vector<8x1xf32>
    %158 = arith.addf %156, %157 : vector<8x1xf32>
    %159 = math.rsqrt %158 : vector<8x1xf32>
    %160 = arith.mulf %145, %159 : vector<8x1xf32>
    %161 = tpu.iota {dimensions = array<i32: 1>} : vector<8x3xi32>
    %c0_i32_50 = arith.constant 0 : i32
    %162 = vector.broadcast %c0_i32_50 : i32 to vector<8x3xi32>
    %163 = arith.cmpi eq, %161, %162 : vector<8x3xi32>
    %c1_i32_51 = arith.constant 1 : i32
    %164 = vector.broadcast %c1_i32_51 : i32 to vector<8x3xi32>
    %165 = arith.cmpi eq, %161, %164 : vector<8x3xi32>
    %166 = vector.shape_cast %155 : vector<8x1xf32> to vector<8x1xf32>
    %167 = vector.broadcast %166 : vector<8x1xf32> to vector<8x3xf32>
    %168 = vector.shape_cast %160 : vector<8x1xf32> to vector<8x1xf32>
    %169 = vector.broadcast %168 : vector<8x1xf32> to vector<8x3xf32>
    %170 = arith.select %165, %167, %169 : vector<8x3xi1>, vector<8x3xf32>
    %171 = vector.shape_cast %150 : vector<8x1xf32> to vector<8x1xf32>
    %172 = vector.broadcast %171 : vector<8x1xf32> to vector<8x3xf32>
    %173 = arith.select %163, %172, %170 : vector<8x3xi1>, vector<8x3xf32>
    %c0_52 = arith.constant 0 : index
    %c0_53 = arith.constant 0 : index
    %174 = vector.load %arg6[%c0_52, %c0_53] : memref<24x32xf32, #tpu.memory_space<vmem>>, vector<16x32xf32>
    tpu.vector_store %arg6[%c0_52, %c0_53], %120 {strides = array<i32>} : memref<24x32xf32, #tpu.memory_space<vmem>>, vector<16x32xf32>,
    %c16_54 = arith.constant 16 : index
    %c0_55 = arith.constant 0 : index
    %175 = vector.load %arg6[%c16_54, %c0_55] : memref<24x32xf32, #tpu.memory_space<vmem>>, vector<8x32xf32>
    tpu.vector_store %arg6[%c16_54, %c0_55], %124 {strides = array<i32>} : memref<24x32xf32, #tpu.memory_space<vmem>>, vector<8x32xf32>,
    %c0_56 = arith.constant 0 : index
    %c0_57 = arith.constant 0 : index
    %176 = vector.load %arg6[%c0_56, %c0_57] : memref<24x32xf32, #tpu.memory_space<vmem>>, vector<24x32xf32>
    %c96 = arith.constant 96 : index
    %c0_58 = arith.constant 0 : index
    %177 = vector.load %arg3[%c96, %c0_58] : memref<320x128xf32, #tpu.memory_space<vmem>>, vector<32x128xf32>
    %cst_59 = arith.constant dense<0.000000e+00> : vector<24x128xf32>
    %178 = tpu.matmul %176, %177, %cst_59 {dimension_numbers = #tpu.dot_dimension_numbers<[1], [0], [0], [1], [0, 0, 1, 1], [], []>} : vector<24x32xf32>, vector<32x128xf32>, vector<24x128xf32> -> vector<24x128xf32>
    %179 = vector.broadcast %2 : vector<1x128xf32> to vector<24x128xf32>
    %180 = arith.addf %178, %179 : vector<24x128xf32>
    %cst_60 = arith.constant 0.000000e+00 : f32
    %181 = vector.broadcast %cst_60 : f32 to vector<24x128xf32>
    %182 = arith.maximumf %180, %181 : vector<24x128xf32>
    %183 = vector.extract_strided_slice %182 {offsets = [0, 0], sizes = [8, 32], strides = [1, 1]} : vector<24x128xf32> to vector<8x32xf32>
    %184 = vector.extract_strided_slice %182 {offsets = [8, 0], sizes = [8, 32], strides = [1, 1]} : vector<24x128xf32> to vector<8x32xf32>
    %185 = vector.extract_strided_slice %182 {offsets = [16, 32], sizes = [8, 32], strides = [1, 1]} : vector<24x128xf32> to vector<8x32xf32>
    %c0_61 = arith.constant 0 : index
    %c0_62 = arith.constant 0 : index
    %186 = vector.load %arg7[%c0_61, %c0_62] : memref<8x96xf32, #tpu.memory_space<vmem>>, vector<8x32xf32>
    tpu.vector_store %arg7[%c0_61, %c0_62], %183 {strides = array<i32>} : memref<8x96xf32, #tpu.memory_space<vmem>>, vector<8x32xf32>,
    %c0_63 = arith.constant 0 : index
    %c32 = arith.constant 32 : index
    %187 = vector.load %arg7[%c0_63, %c32] : memref<8x96xf32, #tpu.memory_space<vmem>>, vector<8x32xf32>
    tpu.vector_store %arg7[%c0_63, %c32], %184 {strides = array<i32>} : memref<8x96xf32, #tpu.memory_space<vmem>>, vector<8x32xf32>,
    %c0_64 = arith.constant 0 : index
    %c64_65 = arith.constant 64 : index
    %188 = vector.load %arg7[%c0_64, %c64_65] : memref<8x96xf32, #tpu.memory_space<vmem>>, vector<8x32xf32>
    tpu.vector_store %arg7[%c0_64, %c64_65], %185 {strides = array<i32>} : memref<8x96xf32, #tpu.memory_space<vmem>>, vector<8x32xf32>,
    %c0_66 = arith.constant 0 : index
    %c0_67 = arith.constant 0 : index
    %189 = vector.load %arg7[%c0_66, %c0_67] : memref<8x96xf32, #tpu.memory_space<vmem>>, vector<8x96xf32>
    %c128 = arith.constant 128 : index
    %c0_68 = arith.constant 0 : index
    %190 = vector.load %arg3[%c128, %c0_68] : memref<320x128xf32, #tpu.memory_space<vmem>>, vector<96x128xf32>
    %cst_69 = arith.constant dense<0.000000e+00> : vector<8x128xf32>
    %191 = tpu.matmul %189, %190, %cst_69 {dimension_numbers = #tpu.dot_dimension_numbers<[1], [0], [0], [1], [0, 0, 1, 1], [], []>} : vector<8x96xf32>, vector<96x128xf32>, vector<8x128xf32> -> vector<8x128xf32>
    %192 = vector.broadcast %3 : vector<1x128xf32> to vector<8x128xf32>
    %193 = arith.addf %191, %192 : vector<8x128xf32>
    %194 = vector.extract_strided_slice %193 {offsets = [0, 0], sizes = [8, 64], strides = [1, 1]} : vector<8x128xf32> to vector<8x64xf32>
    %cst_70 = arith.constant 0.000000e+00 : f32
    %195 = vector.broadcast %cst_70 : f32 to vector<8x64xf32>
    %196 = arith.maximumf %194, %195 : vector<8x64xf32>
    %197 = vector.extract_strided_slice %193 {offsets = [0, 64], sizes = [8, 4], strides = [1, 1]} : vector<8x128xf32> to vector<8x4xf32>
    %198 = vector.extract_strided_slice %193 {offsets = [0, 68], sizes = [8, 4], strides = [1, 1]} : vector<8x128xf32> to vector<8x4xf32>
    %c224 = arith.constant 224 : index
    %c0_71 = arith.constant 0 : index
    %199 = vector.load %arg3[%c224, %c0_71] : memref<320x128xf32, #tpu.memory_space<vmem>>, vector<64x128xf32>
    %cst_72 = arith.constant dense<0.000000e+00> : vector<8x128xf32>
    %200 = tpu.matmul %196, %199, %cst_72 {dimension_numbers = #tpu.dot_dimension_numbers<[1], [0], [0], [1], [0, 0, 1, 1], [], []>} : vector<8x64xf32>, vector<64x128xf32>, vector<8x128xf32> -> vector<8x128xf32>
    %201 = vector.broadcast %4 : vector<1x128xf32> to vector<8x128xf32>
    %202 = arith.addf %200, %201 : vector<8x128xf32>
    %cst_73 = arith.constant 0.000000e+00 : f32
    %203 = vector.broadcast %cst_73 : f32 to vector<8x128xf32>
    %204 = arith.maximumf %202, %203 : vector<8x128xf32>
    %205 = vector.extract_strided_slice %204 {offsets = [0, 0], sizes = [8, 32], strides = [1, 1]} : vector<8x128xf32> to vector<8x32xf32>
    %c288 = arith.constant 288 : index
    %c0_74 = arith.constant 0 : index
    %206 = vector.load %arg3[%c288, %c0_74] : memref<320x128xf32, #tpu.memory_space<vmem>>, vector<32x128xf32>
    %cst_75 = arith.constant dense<0.000000e+00> : vector<8x128xf32>
    %207 = tpu.matmul %205, %206, %cst_75 {dimension_numbers = #tpu.dot_dimension_numbers<[1], [0], [0], [1], [0, 0, 1, 1], [], []>} : vector<8x32xf32>, vector<32x128xf32>, vector<8x128xf32> -> vector<8x128xf32>
    %208 = vector.broadcast %5 : vector<1x128xf32> to vector<8x128xf32>
    %209 = arith.addf %207, %208 : vector<8x128xf32>
    %210 = vector.extract_strided_slice %209 {offsets = [0, 0], sizes = [8, 4], strides = [1, 1]} : vector<8x128xf32> to vector<8x4xf32>
    %cst_76 = arith.constant 0.000000e+00 : f32
    %211 = vector.broadcast %cst_76 : f32 to vector<8x128xf32>
    %c0_77 = arith.constant 0 : index
    %c0_78 = arith.constant 0 : index
    %212 = vector.load %arg5[%c0_77, %c0_78] : memref<8x128xf32, #tpu.memory_space<vmem>>, vector<8x128xf32>
    tpu.vector_store %arg5[%c0_77, %c0_78], %211 {strides = array<i32>} : memref<8x128xf32, #tpu.memory_space<vmem>>, vector<8x128xf32>,
    %c0_79 = arith.constant 0 : index
    %c0_80 = arith.constant 0 : index
    %213 = vector.load %arg5[%c0_79, %c0_80] : memref<8x128xf32, #tpu.memory_space<vmem>>, vector<8x3xf32>
    tpu.vector_store %arg5[%c0_79, %c0_80], %173 {strides = array<i32>} : memref<8x128xf32, #tpu.memory_space<vmem>>, vector<8x3xf32>,
    %c0_81 = arith.constant 0 : index
    %c3 = arith.constant 3 : index
    %214 = vector.load %arg5[%c0_81, %c3] : memref<8x128xf32, #tpu.memory_space<vmem>>, vector<8x4xf32>
    tpu.vector_store %arg5[%c0_81, %c3], %197 {strides = array<i32>} : memref<8x128xf32, #tpu.memory_space<vmem>>, vector<8x4xf32>,
    %c0_82 = arith.constant 0 : index
    %c7 = arith.constant 7 : index
    %215 = vector.load %arg5[%c0_82, %c7] : memref<8x128xf32, #tpu.memory_space<vmem>>, vector<8x4xf32>
    tpu.vector_store %arg5[%c0_82, %c7], %198 {strides = array<i32>} : memref<8x128xf32, #tpu.memory_space<vmem>>, vector<8x4xf32>,
    %c0_83 = arith.constant 0 : index
    %c11 = arith.constant 11 : index
    %216 = vector.load %arg5[%c0_83, %c11] : memref<8x128xf32, #tpu.memory_space<vmem>>, vector<8x4xf32>
    tpu.vector_store %arg5[%c0_83, %c11], %210 {strides = array<i32>} : memref<8x128xf32, #tpu.memory_space<vmem>>, vector<8x4xf32>,
    return
  }
}

</mosaic_0001>

<bundles_post_ra>
// kernel: multiple_images_forward.1
= control target key start
LH: loop header
LB: loop body
LE: loop exit
PB: predicated region body
PF: predicated region fallthrough
CT: control target
= control target key end

     0   :  { %v811_v0 = vmov 0   ;;  %v37_v24 = vlaneseq  ;;  %vm143_vm0 = vcmask 523264   ;;  %v812_v28 = vmov 0.0   ;;  %s814_s30 = smov 32   ;;  %s816_s16 = smov 67   ;;  %s1225_s0 = inlined_call_operand.vmem [shape: s32[128,1], index: 0, kind: input, shape index: {}]   ;;  %s1226_s1 = inlined_call_operand.vmem [shape: f32[1,128], index: 1, kind: input, shape index: {}]   ;;  %s1227_s3 = inlined_call_operand.vmem [shape: f32[320,128], index: 3, kind: input, shape index: {}]   ;;  %s1228_s2 = inlined_call_operand.vmem [shape: f32[8,1536], index: 2, kind: input, shape index: {}]   ;;  %s1229_s4 = inlined_call_operand.vmem [shape: f32[8,128], index: 4, kind: input, shape index: {}]   ;;  %s1230_s5 = inlined_call_operand.vmem [shape: f32[8,128], index: 5, kind: output, shape index: {}]  }
   0x1   :  { %799 = vset.pattern.permute.xlu2 %v811_v0  ;;  %798 = vset.pattern.permute.xlu1 %v811_v0  ;;  %v34_v1 = vld [vmem:[%s1225_s0 + $0x68] sm:$0xff]  ;;  %v28_v2 = vld [vmem:[%s1225_s0 + $0x38] sm:$0xff]  ;;  %v21_v3 = vld [vmem:[%s1225_s0] sm:$0xff]  ;;  %702 = vst [vmem:[%s1230_s5] sm:$0xff] %v812_v28 }
   0x2   :  { %797 = vset.pattern.permute.xlu0 %v811_v0  ;;  %79 = vperm.xlu1 %798, %v34_v1   ;;  %v23_v4 = vld [vmem:[%s1225_s0 + $0x10] sm:$0xff]  ;;  %v22_v6 = vld [vmem:[%s1225_s0 + $0x8] sm:$0xff]  ;;  %v24_v7 = vld [vmem:[%s1225_s0 + $0x18] sm:$0xff]  ;;  %v920_v26 = vand.u32 127, %v37_v24  ;;  %v258_v33 = vshrl.u32 %v37_v24, 7 }
   0x3   :  { %61 = vperm.xlu2 %799, %v28_v2   ;;  %40 = vperm.xlu0 %797, %v21_v3   ;;  %v35_v5 = vld [vmem:[%s1225_s0 + $0x70] sm:$0xff]  ;;  %v29_v8 = vld [vmem:[%s1225_s0 + $0x40] sm:$0xff]  ;;  %v32_v9 = vld [vmem:[%s1225_s0 + $0x58] sm:$0xff] }
   0x4   :  { %v33_v10 = vld [vmem:[%s1225_s0 + $0x60] sm:$0xff]  ;;  %v36_v12 = vld [vmem:[%s1225_s0 + $0x78] sm:$0xff]  ;;  %v26_v13 = vld [vmem:[%s1225_s0 + $0x28] sm:$0xff]  ;;  %v260_v36 = vmul.u32 8, %v258_v33  ;;  %v259_v42 = vadd.s32 8, %v258_v33 }
   0x5   :  { %v25_v11 = vld [vmem:[%s1225_s0 + $0x20] sm:$0xff]  ;;  %v31_v14 = vld [vmem:[%s1225_s0 + $0x50] sm:$0xff]  ;;  %v30_v15 = vld [vmem:[%s1225_s0 + $0x48] sm:$0xff] }
   0x6   :  { %v27_v16 = vld [vmem:[%s1225_s0 + $0x30] sm:$0xff]  ;;  %v142_v17 = vld [vmem:[%s1227_s3 + $0x38] sm:$0xff]  ;;  %v140_v19 = vld [vmem:[%s1227_s3 + $0x28] sm:$0xff]  ;;  %v264_v39 = vadd.s32 8, %v260_v36  ;;  %vm262_vm6 = vcmp.ge.s32.totalorder %v920_v26, %v260_v36  ;;  %v261_v47 = vmul.u32 8, %v259_v42  ;;  %s815_s0 = smov 96  }
   0x7   :  { %v141_v18 = vld [vmem:[%s1227_s3 + $0x30] sm:$0xff]  ;;  %200 = vmatpush.msra.mxu0 %v142_v17  ;;  %766 = vmatpush.msra.mxu1 %v142_v17  ;;  %v139_v20 = vld [vmem:[%s1227_s3 + $0x20] sm:$0xff]  ;;  %v138_v21 = vld [vmem:[%s1227_s3 + $0x18] sm:$0xff] }
   0x8   :  { %768 = vmatpush.msra.mxu3 %v142_v17  ;;  %767 = vmatpush.msra.mxu2 %v142_v17  ;;  %v137_v22 = vld [vmem:[%s1227_s3 + $0x10] sm:$0xff]  ;;  %v136_v23 = vld [vmem:[%s1227_s3 + $0x8] sm:$0xff]  ;;  %v135_v25 = vld [vmem:[%s1227_s3] sm:$0xff]  ;;  %vm266_vm7 = vcmp.lt.s32.totalorder %v920_v26, %v264_v39  ;;  %v265_v49 = vadd.s32 8, %v261_v47  ;;  %vm263_vm10 = vcmp.ge.s32.totalorder %v920_v26, %v261_v47 }
   0x9   :  { %201 = vmatpush.msra.mxu0 %v141_v18  ;;  %769 = vmatpush.msra.mxu1 %v141_v18  ;;  %vm268_vm8 = vmand %vm262_vm6, %vm266_vm7  ;;  %v800_v40 = vld [vmem:[%s1226_s1] ss:$0 sm:$0xff]  ;;  %v350_v47 = vld [vmem:[%s1228_s2 + $0x58] sm:$0xff] }
   0xa   :  { %46 = vperm.xlu1 %798, %v23_v4   ;;  %771 = vmatpush.msra.mxu3 %v141_v18  ;;  %v755_v41 = vsel %vm268_vm8, 1.0, %v812_v28  ;;  %vm267_vm11 = vcmp.lt.s32.totalorder %v920_v26, %v265_v49  ;;  %v343_v33 = vld [vmem:[%s1228_s2 + $0x20] sm:$0xff] }
   0xb   :  { %82 = vperm.xlu2 %799, %v35_v5   ;;  %43 = vperm.xlu0 %797, %v22_v6   ;;  %v942_v45 = vmul.f32 %v800_v40, %v755_v41  ;;  %vm269_vm12 = vmand %vm263_vm10, %vm267_vm11  ;;  %v347_v39 = vld [vmem:[%s1228_s2 + $0x40] sm:$0xff] }
   0xc   :  { %770 = vmatpush.msra.mxu2 %v141_v18  ;;  %202 = vmatpush.msra.mxu0 %v140_v19  ;;  %v756_v50 = vsel %vm269_vm12, 1.0, %v812_v28 }
   0xd   :  { %772 = vmatpush.msra.mxu1 %v140_v19  ;;  %774 = vmatpush.msra.mxu3 %v140_v19  ;;  %v953_v52 = vmul.f32 %v800_v40, %v756_v50 }
   0xe   :  { %773 = vmatpush.msra.mxu2 %v140_v19  ;;  %203 = vmatpush.msra.mxu0 %v139_v20 }
   0xf   :  { %775 = vmatpush.msra.mxu1 %v139_v20  ;;  %777 = vmatpush.msra.mxu3 %v139_v20 }
  0x10   :  { %776 = vmatpush.msra.mxu2 %v139_v20  ;;  %204 = vmatpush.msra.mxu0 %v138_v21  ;;  %v341_v20 = vld [vmem:[%s1228_s2 + $0x10] sm:$0xff] }
  0x11   :  { %778 = vmatpush.msra.mxu1 %v138_v21  ;;  %780 = vmatpush.msra.mxu3 %v138_v21 }
  0x12   :  { %49 = vperm.xlu1 %798, %v24_v7   ;;  %779 = vmatpush.msra.mxu2 %v138_v21  ;;  %v342_v21 = vld [vmem:[%s1228_s2 + $0x18] sm:$0xff] }
  0x13   :  { %64 = vperm.xlu2 %799, %v29_v8   ;;  %73 = vperm.xlu0 %797, %v32_v9  }
  0x14   :  { %205 = vmatpush.msra.mxu0 %v137_v22  ;;  %781 = vmatpush.msra.mxu1 %v137_v22 }
  0x15   :  { %783 = vmatpush.msra.mxu3 %v137_v22  ;;  %782 = vmatpush.msra.mxu2 %v137_v22  ;;  %v339_v22 = vld [vmem:[%s1228_s2] sm:$0xff] }
  0x16   :  { %206 = vmatpush.msra.mxu0 %v136_v23  ;;  %784 = vmatpush.msra.mxu1 %v136_v23 }
  0x17   :  { %786 = vmatpush.msra.mxu3 %v136_v23  ;;  %785 = vmatpush.msra.mxu2 %v136_v23 }
  0x18   :  { %207 = vmatpush.msra.mxu0 %v135_v25  ;;  %787 = vmatpush.msra.mxu1 %v135_v25 }
  0x19   :  { %789 = vmatpush.msra.mxu3 %v135_v25  ;;  %788 = vmatpush.msra.mxu2 %v135_v25  ;;  %v358_v25 = vadd.f32 %v342_v21, %v341_v20 }
  0x1a   :  { %76 = vperm.xlu1 %798, %v33_v10  }
  0x1b   :  { %52 = vperm.xlu2 %799, %v25_v11   ;;  %85 = vperm.xlu0 %797, %v36_v12  }
  0x22   :  { %55 = vperm.xlu1 %798, %v26_v13  }
  0x23   :  { %70 = vperm.xlu2 %799, %v31_v14   ;;  %67 = vperm.xlu0 %797, %v30_v15  }
  0x2b   :  { %58 = vperm.xlu0 %797, %v27_v16  }
  0x4c   :  { %280 = vadd.xlane.f32.xlu1 %v942_v45  ;;  %282 = vadd.xlane.f32.xlu2 %v953_v52 }
  0x54   :  { %359 = vadd.xlane.f32.xlu2 %v358_v25 }
  0x5d   :  { %v62_v27 = vpop.permute.xlu2 %61 }
  0x5e   :  { %vm94_vm1 = vcmp.eq.s32.totalorder %v62_v27, %v920_v26  ;;  %v340_v27 = vld [vmem:[%s1228_s2 + $0x8] sm:$0xff] }
  0x5f   :  { %v730_v29 = vsel %vm94_vm1, 1.0, %v812_v28 }
  0x60   :  { %746 = vmatmul.msk.f32.vlgmr.msra.gmra.mxu1 %vm143_vm0, %v730_v29  ;;  %v351_v29 = vadd.f32 %v340_v27, %v339_v22 }
  0x62   :  { %352 = vadd.xlane.f32.xlu0 %v351_v29 }
  0x65   :  { %v83_v30 = vpop.permute.xlu2 %82 }
  0x66   :  { %vm101_vm5 = vcmp.eq.s32.totalorder %v83_v30, %v920_v26 }
  0x67   :  { %v737_v43 = vsel %vm101_vm5, 1.0, %v812_v28 }
  0x6d   :  { %v65_v31 = vpop.permute.xlu2 %64 }
  0x6e   :  { %vm95_vm2 = vcmp.eq.s32.totalorder %v65_v31, %v920_v26 }
  0x6f   :  { %v731_v32 = vsel %vm95_vm2, 1.0, %v812_v28 }
  0x70   :  { %747 = vmatmul.msk.f32.gmra.mxu1 %vm143_vm0, %v731_v32 }
  0x74   :  { %v80_v34 = vpop.permute.xlu1 %79 }
  0x75   :  { %vm100_vm3 = vcmp.eq.s32.totalorder %v80_v34, %v920_v26  ;;  %v41_v35 = vpop.permute.xlu0 %40  ;;  %v53_v59 = vpop.permute.xlu2 %52  ;;  %v344_v34 = vld [vmem:[%s1228_s2 + $0x28] sm:$0xff] }
  0x76   :  { %v736_v37 = vsel %vm100_vm3, 1.0, %v812_v28  ;;  %vm87_vm4 = vcmp.eq.s32.totalorder %v41_v35, %v920_v26  ;;  %vm91_vm3 = vcmp.eq.s32.totalorder %v53_v59, %v920_v26  ;;  %v365_v35 = vadd.f32 %v344_v34, %v343_v33 }
  0x77   :  { %v723_v38 = vsel %vm87_vm4, 1.0, %v812_v28  ;;  %752 = vmatmul.msk.f32.vlgmr.msra.gmra.mxu3 %vm143_vm0, %v736_v37  ;;  %v727_v63 = vsel %vm91_vm3, 1.0, %v812_v28  ;;  %v345_v37 = vld [vmem:[%s1228_s2 + $0x30] sm:$0xff]  ;;  %vm369_vm3 = vcmp.eq.s32.totalorder %v920_v26, 2 }
  0x78   :  { %739 = vmatmul.msk.f32.vlgmr.msra.gmra.mxu0 %vm143_vm0, %v723_v38  ;;  %v346_v38 = vld [vmem:[%s1228_s2 + $0x38] sm:$0xff]  ;;  %366 = vadd.xlane.f32.xlu1 %v365_v35 }
  0x79   :  { %v372_v42 = vadd.f32 %v346_v38, %v345_v37 }
  0x7b   :  { %373 = vadd.xlane.f32.xlu2 %v372_v42  ;;  %v546_v42 = vld [vmem:[%s1227_s3 + $0x60] sm:$0xff] }
  0x7c   :  { %v47_v44 = vpop.permute.xlu1 %46 }
  0x7d   :  { %v44_v46 = vpop.permute.xlu0 %43  ;;  %vm89_vm13 = vcmp.eq.s32.totalorder %v47_v44, %v920_v26  ;;  %v71_v1 = vpop.permute.xlu2 %70 }
  0x7e   :  { %vm88_vm9 = vcmp.eq.s32.totalorder %v44_v46, %v920_v26  ;;  %v725_v54 = vsel %vm89_vm13, 1.0, %v812_v28  ;;  %vm97_vm5 = vcmp.eq.s32.totalorder %v71_v1, %v920_v26  ;;  %v349_v46 = vld [vmem:[%s1228_s2 + $0x50] sm:$0xff] }
  0x7f   :  { %v724_v48 = vsel %vm88_vm9, 1.0, %v812_v28  ;;  %753 = vmatmul.msk.f32.gmra.mxu3 %vm143_vm0, %v737_v43  ;;  %v733_v3 = vsel %vm97_vm5, 1.0, %v812_v28  ;;  %v348_v43 = vld [vmem:[%s1228_s2 + $0x48] sm:$0xff]  ;;  %vm383_vm5 = vcmp.eq.s32.totalorder %v920_v26, 4 }
  0x80   :  { %740 = vmatmul.msk.f32.gmra.mxu0 %vm143_vm0, %v724_v48  ;;  %v379_v44 = vadd.f32 %v348_v43, %v347_v39  ;;  %v403_v48 = vld [vmem:[%s1227_s3 + $0x58] sm:$0xff]  ;;  %v1092_v43 = vld [vmem:[%s1229_s4] sm:$0xff]  ;;  %s813_s4 = smov 64  }
  0x81   :  { %426 = vmatpush.msrb.mxu2 %v403_v48  ;;  %v549_v39 = vld [vmem:[%s1227_s3 + $0x78] sm:$0xff] }
  0x82   :  { %380 = vadd.xlane.f32.xlu0 %v379_v44  ;;  %572 = vmatpush.msrb.mxu3 %v549_v39  ;;  %v404_v44 = vperm.slane %v1092_v43, 0  ;;  %v646_v39 = vld [vmem:[%s1227_s3 + $0x108] sm:$0xff] }
  0x84   :  { %v50_v51 = vpop.permute.xlu1 %49 }
  0x85   :  { %v74_v53 = vpop.permute.xlu0 %73  ;;  %vm90_vm15 = vcmp.eq.s32.totalorder %v50_v51, %v920_v26  ;;  %v386_v51 = vadd.f32 %v350_v47, %v349_v46 }
  0x86   :  { %vm98_vm14 = vcmp.eq.s32.totalorder %v74_v53, %v920_v26  ;;  %v726_v60 = vsel %vm90_vm15, 1.0, %v812_v28 }
  0x87   :  { %v734_v55 = vsel %vm98_vm14, 1.0, %v812_v28  ;;  %387 = vadd.xlane.f32.xlu1 %v386_v51 }
  0x88   :  { %741 = vmatmul.msk.f32.gmra.mxu0 %vm143_vm0, %v725_v54  ;;  %750 = vmatmul.msk.f32.vlgmr.msra.gmra.mxu2 %vm143_vm0, %v734_v55 }
  0x8c   :  { %v77_v56 = vpop.permute.xlu1 %76 }
  0x8d   :  { %vm99_vm1 = vcmp.eq.s32.totalorder %v77_v56, %v920_v26  ;;  %v86_v57 = vpop.permute.xlu0 %85 }
  0x8e   :  { %v735_v58 = vsel %vm99_vm1, 1.0, %v812_v28  ;;  %vm102_vm2 = vcmp.eq.s32.totalorder %v86_v57, %v920_v26  ;;  %vm362_vm1 = vcmp.eq.s32.totalorder %v920_v26, 1 }
  0x8f   :  { %v738_v61 = vsel %vm102_vm2, 1.0, %v812_v28  ;;  %vm355_vm2 = vcmp.eq.s32.totalorder %v920_v26, 0 }
  0x90   :  { %742 = vmatmul.msk.f32.gmra.mxu0 %vm143_vm0, %v726_v60  ;;  %751 = vmatmul.msk.f32.gmra.mxu2 %vm143_vm0, %v735_v58 }
  0x91   :  { %754 = vmatmul.msk.f32.gmra.mxu3 %vm143_vm0, %v738_v61 }
  0x94   :  { %v56_v2 = vpop.permute.xlu1 %55 }
  0x95   :  { %v68_v62 = vpop.permute.xlu0 %67  ;;  %vm92_vm6 = vcmp.eq.s32.totalorder %v56_v2, %v920_v26 }
  0x96   :  { %vm96_vm4 = vcmp.eq.s32.totalorder %v68_v62, %v920_v26  ;;  %v728_v4 = vsel %vm92_vm6, 1.0, %v812_v28  ;;  %vm390_vm6 = vcmp.eq.s32.totalorder %v920_v26, 5 }
  0x97   :  { %v732_v0 = vsel %vm96_vm4, 1.0, %v812_v28  ;;  %vm376_vm4 = vcmp.eq.s32.totalorder %v920_v26, 3 }
  0x98   :  { %743 = vmatmul.msk.f32.gmra.mxu0 %vm143_vm0, %v727_v63  ;;  %748 = vmatmul.msk.f32.gmra.mxu1 %vm143_vm0, %v732_v0 }
  0x9d   :  { %v59_v5 = vpop.permute.xlu0 %58 }
  0x9e   :  { %vm93_vm7 = vcmp.eq.s32.totalorder %v59_v5, %v920_v26  ;;  %v678_v26 = vperm.slane %v1092_v43, 4 }
  0x9f   :  { %v729_v6 = vsel %vm93_vm7, 1.0, %v812_v28  ;;  %vm393_vm7 = vcmask 261120   ;;  %v676_v28 = vld [vmem:[%s1227_s3 + $0x130] sm:$0xff] }
  0xa0   :  { %744 = vmatmul.msk.f32.gmra.mxu0 %vm143_vm0, %v728_v4  ;;  %749 = vmatmul.msk.f32.gmra.mxu1 %vm143_vm0, %v733_v3 }
  0xa8   :  { %745 = vmatmul.msk.f32.gmra.mxu0 %vm143_vm0, %v729_v6 }
  0xbf   :  { %v281_v13 = vpop.xlane.xlu1 %280  ;;  %v283_v19 = vpop.xlane.xlu2 %282 }
  0xc0   :  { %v993_v16 = vmax.f32 %v281_v13, 1.0  ;;  %v1008_v30 = vmax.f32 %v283_v19, 1.0 }
  0xc2   :  { %801 = vrcp.f32 %v993_v16  ;;  %vm291_vm8 = vweird.f32 %v993_v16  ;;  %v297_v56 = vand.u32 2147483648, %v993_v16  ;;  %v295_v58 = vand.u32 2147483647, %v993_v16 }
  0xc3   :  { %803 = vrcp.f32 %v1008_v30  ;;  %vm306_vm12 = vweird.f32 %v1008_v30  ;;  %v312_v0 = vand.u32 2147483648, %v1008_v30  ;;  %v310_v2 = vand.u32 2147483647, %v1008_v30 }
  0xc4   :  { %v298_v60 = vor.u32 1.1754944e-38, %v297_v56  ;;  %vm296_vm11 = vcmp.eq.f32.partialorder %v295_v58, 8.507059e+37 }
  0xc5   :  { %v313_v4 = vor.u32 1.1754944e-38, %v312_v0  ;;  %vm311_vm15 = vcmp.eq.f32.partialorder %v310_v2, 8.507059e+37 }
  0xc8   :  { %v802_v31 = vpop.eup %801 }
  0xc9   :  { %v287_v36 = vmul.f32 %v802_v31, %v993_v16  ;;  %v804_v50 = vpop.eup %803  ;;  %vm292_vm9 = vweird.f32 %v802_v31  ;;  %v401_v16 = vld [vmem:[%s1227_s3 + $0x48] sm:$0xff] }
  0xca   :  { %v302_v53 = vmul.f32 %v804_v50, %v1008_v30  ;;  %vm293_vm10 = vmor %vm291_vm8, %vm292_vm9  ;;  %vm307_vm13 = vweird.f32 %v804_v50  ;;  %vm594_vm8 = vcmask 523520   ;;  %vm600_vm9 = vcmask 785920  }
  0xcb   :  { %v288_v49 = vsub.f32 1.0, %v287_v36  ;;  %vm308_vm14 = vmor %vm306_vm12, %vm307_vm13 }
  0xcc   :  { %v303_v59 = vsub.f32 1.0, %v302_v53 }
  0xcd   :  { %v289_v54 = vmul.f32 %v802_v31, %v288_v49 }
  0xce   :  { %v304_v62 = vmul.f32 %v804_v50, %v303_v59 }
  0xcf   :  { %v290_v57 = vadd.f32 %v802_v31, %v289_v54 }
  0xd0   :  { %v305_v1 = vadd.f32 %v804_v50, %v304_v62 }
  0xd1   :  { %v294_v61 = vsel %vm293_vm10, %v802_v31, %v290_v57  ;;  %vm616_vm10 = vcmask 785408  }
  0xd2   :  { %v299_v63 = vsel %vm296_vm11, %v298_v60, %v294_v61  ;;  %v309_v5 = vsel %vm308_vm14, %v804_v50, %v305_v1  ;;  %v550_v60 = vperm.slane %v1092_v43, 1 }
  0xd3   :  { %v300_v3 = vmul.f32 %v299_v63, %v942_v45  ;;  %v314_v6 = vsel %vm311_vm15, %v313_v4, %v309_v5 }
  0xd5   :  { %v353_v45 = vpop.xlane.xlu0 %352 }
  0xdd   :  { %v230_v10 = vpop.f32.mrf.mxu1 }
  0xed   :  { %v233_v14 = vpop.f32.mrf.mxu1 }
  0xf5   :  { %v985_v7 = vpop.f32.mrf.mxu0  ;;  %v381_v21 = vpop.xlane.xlu0 %380 }
  0xfa   :  { %v248_v9 = vpop.f32.mrf.mxu3 }
  0xfd   :  { %v987_v8 = vpop.f32.mrf.mxu0 }
 0x102   :  { %v251_v12 = vpop.f32.mrf.mxu3 }
 0x105   :  { %v989_v11 = vpop.f32.mrf.mxu0 }
 0x10b   :  { %v242_v17 = vpop.f32.mrf.mxu2 }
 0x10d   :  { %v991_v15 = vpop.f32.mrf.mxu0 }
 0x113   :  { %v245_v32 = vpop.f32.mrf.mxu2 }
 0x114   :  { %v254_v18 = vpop.f32.mrf.mxu3 }
 0x115   :  { %316 = vmatpush.msrb.mxu1 %v254_v18  ;;  %v221_v23 = vpop.f32.mrf.mxu0  ;;  %v236_v24 = vpop.f32.mrf.mxu1  ;;  %v400_v18 = vld [vmem:[%s1227_s3 + $0x40] sm:$0xff] }
 0x117   :  { %317 = vmatpush.msrb.mxu1 %v251_v12 }
 0x119   :  { %318 = vmatpush.msrb.mxu1 %v248_v9  ;;  %v315_v9 = vmul.f32 %v314_v6, %v953_v52 }
 0x11b   :  { %319 = vmatpush.msrb.mxu1 %v245_v32 }
 0x11d   :  { %320 = vmatpush.msrb.mxu1 %v242_v17  ;;  %v224_v40 = vpop.f32.mrf.mxu0  ;;  %v239_v41 = vpop.f32.mrf.mxu1 }
 0x11f   :  { %321 = vmatpush.msrb.mxu1 %v239_v41  ;;  %v547_v41 = vld [vmem:[%s1227_s3 + $0x68] sm:$0xff] }
 0x121   :  { %322 = vmatpush.msrb.mxu1 %v236_v24 }
 0x123   :  { %323 = vmatpush.msrb.mxu1 %v233_v14  ;;  %v367_v14 = vpop.xlane.xlu1 %366 }
 0x125   :  { %324 = vmatpush.msrb.mxu1 %v230_v10  ;;  %v227_v55 = vpop.f32.mrf.mxu0  ;;  %v402_v10 = vld [vmem:[%s1227_s3 + $0x50] sm:$0xff] }
 0x126   :  { %427 = vmatpush.msrb.mxu2 %v402_v10 }
 0x127   :  { %325 = vmatpush.msrb.mxu1 %v227_v55 }
 0x128   :  { %428 = vmatpush.msrb.mxu2 %v401_v16  ;;  %v608_v16 = vld [vmem:[%s1227_s3 + $0xa8] sm:$0xff] }
 0x129   :  { %326 = vmatpush.msrb.mxu1 %v224_v40  ;;  %v548_v40 = vld [vmem:[%s1227_s3 + $0x70] sm:$0xff] }
 0x12a   :  { %429 = vmatpush.msrb.mxu2 %v400_v18  ;;  %573 = vmatpush.msrb.mxu3 %v548_v40  ;;  %v645_v40 = vld [vmem:[%s1227_s3 + $0x100] sm:$0xff] }
 0x12b   :  { %327 = vmatpush.msrb.mxu1 %v221_v23  ;;  %v382_v23 = vmul.f32 0.00390625, %v381_v21  ;;  %v388_v30 = vpop.xlane.xlu1 %387  ;;  %v606_v21 = vld [vmem:[%s1227_s3 + $0x98] sm:$0xff] }
 0x12c   :  { %v389_v31 = vmul.f32 0.00390625, %v388_v30  ;;  %574 = vmatpush.msrb.mxu3 %v547_v41  ;;  %v644_v41 = vld [vmem:[%s1227_s3 + $0xf8] sm:$0xff] }
 0x12d   :  { %328 = vmatpush.msrb.mxu1 %v991_v15  ;;  %v368_v15 = vmul.f32 0.00390625, %v367_v14  ;;  %v384_v27 = vsel %vm383_vm5, %v382_v23, 0.0  ;;  %v604_v23 = vld [vmem:[%s1227_s3 + $0x88] sm:$0xff] }
 0x12e   :  { %v391_v32 = vsel %vm390_vm6, %v389_v31, 0.0  ;;  %575 = vmatpush.msrb.mxu3 %v546_v42  ;;  %v643_v42 = vld [vmem:[%s1227_s3 + $0xf0] sm:$0xff]  ;;  %vm703_vm6 = vcmask 23552  }
 0x12f   :  { %329 = vmatpush.msrb.mxu1 %v989_v11  ;;  %v370_v19 = vsel %vm369_vm3, %v368_v15, 0.0  ;;  %v609_v15 = vld [vmem:[%s1227_s3 + $0xb0] sm:$0xff] }
 0x131   :  { %330 = vmatpush.msrb.mxu1 %v987_v8  ;;  %v360_v8 = vpop.xlane.xlu2 %359 }
 0x132   :  { %v361_v11 = vmul.f32 0.00390625, %v360_v8 }
 0x133   :  { %331 = vmatpush.msrb.mxu1 %v985_v7  ;;  %v354_v7 = vmul.f32 0.00390625, %v353_v45  ;;  %v613_v45 = vld [vmem:[%s1227_s3 + $0xd0] sm:$0xff] }
 0x134   :  { %332 = vmatmul.f32.vlgmr.msrb.gmra.mxu1 %v300_v3  ;;  %v363_v12 = vsel %vm362_vm1, %v361_v11, 0.0  ;;  %v614_v11 = vld [vmem:[%s1227_s3 + $0xd8] sm:$0xff] }
 0x135   :  { %v356_v52 = vsel %vm355_vm2, %v354_v7, 0.0  ;;  %624 = vmatpush.msra.mxu2 %v614_v11  ;;  %v612_v7 = vld [vmem:[%s1227_s3 + $0xc8] sm:$0xff] }
 0x136   :  { %v364_v13 = vadd.f32 %v363_v12, %v356_v52  ;;  %v611_v12 = vld [vmem:[%s1227_s3 + $0xc0] sm:$0xff] }
 0x137   :  { %625 = vmatpush.msra.mxu2 %v613_v45 }
 0x138   :  { %v371_v22 = vadd.f32 %v370_v19, %v364_v13  ;;  %v610_v13 = vld [vmem:[%s1227_s3 + $0xb8] sm:$0xff] }
 0x139   :  { %v374_v17 = vpop.xlane.xlu2 %373  ;;  %626 = vmatpush.msra.mxu2 %v612_v7 }
 0x13a   :  { %v375_v20 = vmul.f32 0.00390625, %v374_v17  ;;  %v607_v17 = vld [vmem:[%s1227_s3 + $0xa0] sm:$0xff] }
 0x13b   :  { %627 = vmatpush.msra.mxu2 %v611_v12 }
 0x13c   :  { %335 = vmatmul.f32.gmra.mxu1 %v315_v9  ;;  %v377_v24 = vsel %vm376_vm4, %v375_v20, 0.0 }
 0x13d   :  { %v378_v25 = vadd.f32 %v377_v24, %v371_v22  ;;  %628 = vmatpush.msra.mxu2 %v610_v13  ;;  %v605_v22 = vld [vmem:[%s1227_s3 + $0x90] sm:$0xff]  ;;  %v603_v24 = vld [vmem:[%s1227_s3 + $0x80] sm:$0xff] }
 0x13f   :  { %v385_v29 = vadd.f32 %v384_v27, %v378_v25  ;;  %629 = vmatpush.msra.mxu2 %v609_v15 }
 0x141   :  { %v392_v33 = vadd.f32 %v391_v32, %v385_v29  ;;  %630 = vmatpush.msra.mxu2 %v608_v16  ;;  %v648_v32 = vld [vmem:[%s1227_s3 + $0x118] sm:$0xff] }
 0x142   :  { %661 = vmatpush.msra.mxu3 %v648_v32 }
 0x143   :  { %396 = vst.msk [vmem:[#allocation2 + $0x10] sm:$0xff] %vm393_vm7, %v392_v33  ;;  %631 = vmatpush.msra.mxu2 %v607_v17  ;;  %v647_v33 = vld [vmem:[%s1227_s3 + $0x110] sm:$0xff] }
 0x144   :  { %662 = vmatpush.msra.mxu3 %v647_v33 }
 0x145   :  { %632 = vmatpush.msra.mxu2 %v606_v21  ;;  %v649_v21 = vperm.slane %v1092_v43, 3 }
 0x146   :  { %663 = vmatpush.msra.mxu3 %v646_v39 }
 0x147   :  { %633 = vmatpush.msra.mxu2 %v605_v22 }
 0x148   :  { %664 = vmatpush.msra.mxu3 %v645_v40 }
 0x149   :  { %634 = vmatpush.msra.mxu2 %v604_v23 }
 0x14a   :  { %v399_v38 = vld [vmem:[#allocation2 + $0x10] sm:$0xff]  ;;  %665 = vmatpush.msra.mxu3 %v644_v41 }
 0x14b   :  { %635 = vmatpush.msra.mxu2 %v603_v24 }
 0x14c   :  { %666 = vmatpush.msra.mxu3 %v643_v42 }
 0x1b1   :  { %v333_v34 = vpop.f32.mrf.mxu1 }
 0x1b2   :  { %394 = vst.msk [vmem:[#allocation2] sm:$0xff] %vm393_vm7, %v333_v34 }
 0x1b9   :  { %v336_v35 = vpop.f32.mrf.mxu1  ;;  %v397_v36 = vld [vmem:[#allocation2] sm:$0xff] }
 0x1ba   :  { %395 = vst.msk [vmem:[#allocation2 + $0x8] sm:$0xff] %vm393_vm7, %v336_v35  ;;  %757 = vmatmul.msk.f32.vlgmr.msrb.gmra.mxu2 %vm393_vm7, %v397_v36 }
 0x1c1   :  { %v398_v37 = vld [vmem:[#allocation2 + $0x8] sm:$0xff] }
 0x1c2   :  { %758 = vmatmul.msk.f32.gmra.mxu2 %vm393_vm7, %v398_v37 }
 0x1ca   :  { %759 = vmatmul.msk.f32.gmra.mxu2 %vm393_vm7, %v399_v38 }
 0x23d   :  { %v431_v46 = vpop.f32.mrf.mxu2 }
 0x23e   :  { %v1095_v47 = vadd.f32 %v431_v46, %v404_v44  ;;  %v641_v46 = vld [vmem:[%s1227_s3 + $0xe0] sm:$0xff] }
 0x240   :  { %v440_v48 = vmax.f32 %v1095_v47, 0.0  ;;  %v443_v3 = vmul.f32 %v1095_v47, %v1095_v47 }
 0x242   :  { %536 = vst.msk [vmem:[#allocation2] sm:$0xff] %vm393_vm7, %v440_v48 }
 0x245   :  { %v434_v49 = vpop.f32.mrf.mxu2 }
 0x246   :  { %v1099_v50 = vadd.f32 %v434_v49, %v404_v44 }
 0x248   :  { %v441_v51 = vmax.f32 %v1099_v50, 0.0  ;;  %v451_v4 = vmul.f32 %v1099_v50, %v1099_v50  ;;  %v467_v20 = vmul.f32 %v1099_v50, %v1095_v47 }
 0x249   :  { %v543_v53 = vld [vmem:[#allocation2] sm:$0xff] }
 0x24a   :  { %537 = vst.msk [vmem:[#allocation2 + $0x8] sm:$0xff] %vm393_vm7, %v441_v51  ;;  %760 = vmatmul.msk.f32.vlgmr.msrb.gmra.mxu3 %vm393_vm7, %v543_v53 }
 0x24d   :  { %v437_v54 = vpop.f32.mrf.mxu2 }
 0x24e   :  { %v438_v55 = vadd.f32 %v437_v54, %v404_v44  ;;  %v642_v44 = vld [vmem:[%s1227_s3 + $0xe8] sm:$0xff] }
 0x24f   :  { %667 = vmatpush.msra.mxu3 %v642_v44 }
 0x250   :  { %v442_v56 = vmax.f32 %v438_v55, 0.0  ;;  %v459_v10 = vmul.f32 %v438_v55, %v438_v55 }
 0x251   :  { %v544_v57 = vld [vmem:[#allocation2 + $0x8] sm:$0xff]  ;;  %668 = vmatpush.msra.mxu3 %v641_v46 }
 0x252   :  { %761 = vmatmul.msk.f32.gmra.mxu3 %vm393_vm7, %v544_v57  ;;  %539 = vrot.lane.b32.xlu2 %v442_v56, %s813_s4 }
 0x2ac   :  { %v540_v58 = vpop.permute.xlu2 %539 }
 0x2ad   :  { %542 = vst.msk [vmem:[#allocation2 + $0x10] sm:$0xff] %vm393_vm7, %v540_v58  ;;  %v677_v58 = vld [vmem:[%s1227_s3 + $0x138] sm:$0xff] }
 0x2ae   :  { %694 = vmatpush.msrb.mxu2 %v677_v58 }
 0x2b0   :  { %695 = vmatpush.msrb.mxu2 %v676_v28 }
 0x2b4   :  { %v545_v59 = vld [vmem:[#allocation2 + $0x10] sm:$0xff] }
 0x2b5   :  { %762 = vmatmul.msk.f32.gmra.mxu3 %vm393_vm7, %v545_v59 }
 0x2cd   :  { %v577_v61 = vpop.f32.mrf.mxu3 }
 0x2ce   :  { %v578_v62 = vadd.f32 %v577_v61, %v550_v60 }
 0x2d0   :  { %v586_v63 = vmax.f32 %v578_v62, 0.0 }
 0x2d2   :  { %589 = vst.msk [vmem:[#allocation3] sm:$0xff] %vm393_vm7, %v586_v63 }
 0x2d5   :  { %v580_v0 = vpop.f32.mrf.mxu3 }
 0x2d6   :  { %v581_v1 = vadd.f32 %v580_v0, %v550_v60 }
 0x2d8   :  { %v587_v2 = vmax.f32 %v581_v1, 0.0  ;;  %v675_v1 = vld [vmem:[%s1227_s3 + $0x128] sm:$0xff] }
 0x2d9   :  { %696 = vmatpush.msrb.mxu2 %v675_v1 }
 0x2da   :  { %591 = vrot.lane.b32.xlu0 %v587_v2, %s814_s30  ;;  %v674_v2 = vld [vmem:[%s1227_s3 + $0x120] sm:$0xff] }
 0x2db   :  { %697 = vmatpush.msrb.mxu2 %v674_v2 }
 0x2e2   :  { %445 = vrot.lane.b32.xlu0 %v443_v3, %s815_s0 }
 0x2ea   :  { %453 = vrot.lane.b32.xlu0 %v451_v4, %s815_s0 }
 0x338   :  { %v583_v5 = vpop.f32.mrf.mxu3 }
 0x339   :  { %v584_v6 = vadd.f32 %v583_v5, %v550_v60 }
 0x33b   :  { %v588_v9 = vmax.f32 %v584_v6, 0.0 }
 0x33d   :  { %597 = vrot.lane.b32.xlu1 %v588_v9, %s814_s30 }
 0x345   :  { %476 = vrot.lane.b32.xlu1 %v438_v55, %s813_s4 }
 0x34c   :  { %v592_v8 = vpop.permute.xlu0 %591 }
 0x34d   :  { %595 = vst.msk [vmem:[#allocation3] sm:$0xff] %vm594_vm8, %v592_v8  ;;  %461 = vrot.lane.b32.xlu1 %v459_v10, %s814_s30  ;;  %vm709_vm8 = vcmask 56344   ;;  %s817_s30 = smov 11  }
 0x354   :  { %v446_v52 = vpop.permute.xlu0 %445 }
 0x355   :  { %v448_v14 = vsel %vm393_vm7, %v446_v52, 0.0 }
 0x356   :  { %449 = vadd.xlane.f32.xlu2 %v448_v14 }
 0x35c   :  { %v454_v18 = vpop.permute.xlu0 %453 }
 0x35d   :  { %v456_v19 = vsel %vm393_vm7, %v454_v18, 0.0 }
 0x35e   :  { %457 = vadd.xlane.f32.xlu0 %v456_v19 }
 0x36e   :  { %469 = vrot.lane.b32.xlu2 %v467_v20, %s815_s0 }
 0x3af   :  { %v598_v25 = vpop.permute.xlu1 %597 }
 0x3b0   :  { %601 = vst.msk [vmem:[#allocation3] sm:$0xff] %vm600_vm9, %v598_v25  ;;  %vm711_vm9 = vcmask 89144  }
 0x3b7   :  { %v477_v27 = vpop.permute.xlu1 %476  ;;  %v602_v29 = vld [vmem:[#allocation3] sm:$0xff] }
 0x3b8   :  { %v479_v30 = vmul.f32 %v477_v27, %v1095_v47  ;;  %763 = vmatmul.msk.f32.vlgmr.msra.gmra.mxu2 %vm616_vm10, %v602_v29  ;;  %v487_v38 = vmul.f32 %v477_v27, %v1099_v50  ;;  %v615_v50 = vperm.slane %v1092_v43, 2 }
 0x3ba   :  { %481 = vrot.lane.b32.xlu0 %v479_v30, %s815_s0 }
 0x3bf   :  { %v462_v31 = vpop.permute.xlu1 %461 }
 0x3c0   :  { %v464_v34 = vsel %vm393_vm7, %v462_v31, 0.0 }
 0x3c1   :  { %465 = vadd.xlane.f32.xlu1 %v464_v34 }
 0x3c9   :  { %v450_v35 = vpop.xlane.xlu2 %449 }
 0x3d1   :  { %v470_v36 = vpop.permute.xlu2 %469  ;;  %v458_v47 = vpop.xlane.xlu0 %457 }
 0x3d2   :  { %v472_v37 = vsel %vm393_vm7, %v470_v36, 0.0  ;;  %v495_v61 = vmul.f32 %v458_v47, %v450_v35 }
 0x3d3   :  { %473 = vadd.xlane.f32.xlu2 %v472_v37 }
 0x3d4   :  { %v496_v0 = vadd.f32 1e-08, %v495_v61 }
 0x3d6   :  { %vm503_vm3 = vweird.f32 %v496_v0 }
 0x3da   :  { %489 = vrot.lane.b32.xlu1 %v487_v38, %s815_s0 }
 0x42c   :  { %v482_v48 = vpop.permute.xlu0 %481 }
 0x42d   :  { %v484_v49 = vsel %vm393_vm7, %v482_v48, 0.0 }
 0x42e   :  { %485 = vadd.xlane.f32.xlu0 %v484_v49 }
 0x434   :  { %v466_v55 = vpop.xlane.xlu1 %465 }
 0x435   :  { %v508_v59 = vmul.f32 %v466_v55, %v450_v35  ;;  %v521_v60 = vmul.f32 %v466_v55, %v458_v47 }
 0x437   :  { %v509_v62 = vadd.f32 1e-08, %v508_v59  ;;  %v522_v63 = vadd.f32 1e-08, %v521_v60 }
 0x439   :  { %805 = vrsqrt.f32 %v509_v62  ;;  %vm516_vm13 = vweird.f32 %v509_v62  ;;  %vm529_vm15 = vweird.f32 %v522_v63 }
 0x43a   :  { %807 = vrsqrt.f32 %v522_v63 }
 0x43b   :  { %v637_v51 = vpop.f32.mrf.mxu2  ;;  %809 = vrsqrt.f32 %v496_v0 }
 0x43c   :  { %v638_v53 = vadd.f32 %v637_v51, %v615_v50 }
 0x43e   :  { %v640_v54 = vmax.f32 %v638_v53, 0.0  ;;  %706 = vrot.lane.b32.xlu2 %v638_v53, %s816_s16 }
 0x43f   :  { %v806_v3 = vpop.eup %805 }
 0x440   :  { %764 = vmatmul.msk.f32.vlgmr.msra.gmra.mxu3 %vm143_vm0, %v640_v54  ;;  %v808_v4 = vpop.eup %807  ;;  %v511_v6 = vmul.f32 %v806_v3, %v509_v62  ;;  %vm517_vm0 = vweird.f32 %v806_v3 }
 0x441   :  { %v810_v5 = vpop.eup %809  ;;  %v524_v9 = vmul.f32 %v808_v4, %v522_v63  ;;  %vm530_vm11 = vweird.f32 %v808_v4  ;;  %vm518_vm14 = vmor %vm516_vm13, %vm517_vm0 }
 0x442   :  { %v498_v10 = vmul.f32 %v810_v5, %v496_v0  ;;  %v512_v8 = vmul.f32 %v806_v3, %v511_v6  ;;  %vm504_vm12 = vweird.f32 %v810_v5  ;;  %vm531_vm4 = vmor %vm529_vm15, %vm530_vm11 }
 0x443   :  { %v525_v11 = vmul.f32 %v808_v4, %v524_v9  ;;  %vm505_vm5 = vmor %vm503_vm3, %vm504_vm12 }
 0x444   :  { %v499_v45 = vmul.f32 %v810_v5, %v498_v10  ;;  %v513_v7 = vmul.f32 0.5, %v512_v8 }
 0x445   :  { %v526_v12 = vmul.f32 0.5, %v525_v11 }
 0x446   :  { %v500_v52 = vmul.f32 0.5, %v499_v45  ;;  %v514_v13 = vsub.f32 1.5, %v513_v7  ;;  %v474_v18 = vpop.xlane.xlu2 %473 }
 0x447   :  { %v527_v14 = vsub.f32 1.5, %v526_v12 }
 0x448   :  { %v501_v15 = vsub.f32 1.5, %v500_v52  ;;  %v515_v16 = vmul.f32 %v806_v3, %v514_v13 }
 0x449   :  { %v528_v17 = vmul.f32 %v808_v4, %v527_v14 }
 0x44a   :  { %v502_v19 = vmul.f32 %v810_v5, %v501_v15  ;;  %v519_v22 = vsel %vm518_vm14, %v806_v3, %v515_v16 }
 0x44b   :  { %v532_v24 = vsel %vm531_vm4, %v808_v4, %v528_v17 }
 0x44c   :  { %v490_v56 = vpop.permute.xlu1 %489  ;;  %v506_v25 = vsel %vm505_vm5, %v810_v5, %v502_v19 }
 0x44d   :  { %v492_v57 = vsel %vm393_vm7, %v490_v56, 0.0  ;;  %v507_v30 = vmul.f32 %v506_v25, %v474_v18 }
 0x44e   :  { %493 = vadd.xlane.f32.xlu1 %v492_v57 }
 0x498   :  { %v707_v35 = vpop.permute.xlu2 %706 }
 0x4a1   :  { %v486_v20 = vpop.xlane.xlu0 %485 }
 0x4a2   :  { %v520_v27 = vmul.f32 %v519_v22, %v486_v20 }
 0x4c1   :  { %v494_v23 = vpop.xlane.xlu1 %493 }
 0x4c2   :  { %v533_v29 = vmul.f32 %v532_v24, %v494_v23 }
 0x4c3   :  { %v670_v31 = vpop.f32.mrf.mxu3 }
 0x4c4   :  { %v534_v32 = vsel %vm362_vm1, %v520_v27, %v533_v29  ;;  %v671_v33 = vadd.f32 %v670_v31, %v649_v21  ;;  %vm717_vm1 = vcmask 121944  }
 0x4c5   :  { %v535_v34 = vsel %vm355_vm2, %v507_v30, %v534_v32 }
 0x4c6   :  { %v673_v36 = vmax.f32 %v671_v33, 0.0  ;;  %704 = vst.msk [vmem:[%s1230_s5] sm:$0xff] %vm703_vm6, %v535_v34 }
 0x4c7   :  { %710 = vst.msk [vmem:[%s1230_s5] sm:$0xff] %vm709_vm8, %v707_v35 }
 0x4c8   :  { %765 = vmatmul.msk.f32.vlgmr.msrb.gmra.mxu2 %vm393_vm7, %v673_v36  ;;  %712 = vst.msk [vmem:[%s1230_s5] sm:$0xff] %vm711_vm9, %v707_v35 }
 0x54b   :  { %v699_v37 = vpop.f32.mrf.mxu2 }
 0x54c   :  { %v700_v38 = vadd.f32 %v699_v37, %v678_v26 }
 0x54e   :  { %714 = vrot.lane.b32.xlu0 %v700_v38, %s817_s30 }
 0x5c0   :  { %v715_v39 = vpop.permute.xlu0 %714 }
 0x5c1   :  { %718 = vst.msk [vmem:[%s1230_s5] sm:$0xff] %vm717_vm1, %v715_v39 }

</bundles_post_ra>
